<compile_context>
chip_gen: v7x
topology: tpu7x:2x2x1
jax: 0.10.0
libtpu: 0.0.40
codegen_flags: <defaults>
</compile_context>

<pallas_src>
import functools

import numpy as np
import jax
import jax.numpy as jnp
from jax import lax
from jax.experimental import pallas as pl
from jax.experimental.pallas import tpu as pltpu

LN_EPS = 1e-5  # PyTorch nn.LayerNorm default


def _erf_approx(x):
    # Abramowitz & Stegun 7.1.26 polynomial erf (|err| < 1.5e-7); exp/abs/where only,
    # so it lowers cleanly in Mosaic and keeps exact-GELU fidelity.
    a1, a2, a3, a4, a5 = 0.254829592, -0.284496736, 1.421413741, -1.453152027, 1.061405429
    p = 0.3275911
    sgn = jnp.where(x >= 0.0, 1.0, -1.0)
    ax = jnp.abs(x)
    t = 1.0 / (1.0 + p * ax)
    poly = ((((a5 * t + a4) * t + a3) * t + a2) * t + a1) * t
    return sgn * (1.0 - poly * jnp.exp(-ax * ax))


def _gelu_exact(x):
    return 0.5 * x * (1.0 + _erf_approx(x * np.float32(2.0 ** -0.5)))


def _layernorm(x, gamma, beta):
    x = x.astype(jnp.float32)  # keep LN statistics in f32 even for bf16 callers
    mu = jnp.mean(x, axis=-1, keepdims=True)
    var = jnp.mean(jnp.square(x - mu), axis=-1, keepdims=True)
    return (x - mu) * lax.rsqrt(var + LN_EPS) * gamma + beta


def _mha_encoder_kernel(x_ref, wq_ref, wk_ref, wv_ref,
                        g1_ref, be1_ref,
                        w1_ref, bb1_ref, w2_ref, bb2_ref,
                        g2_ref, be2_ref,
                        o_ref,
                        k_scr, v_scr, q_scr, attn_scr,
                        *, n_heads, tq):
    qi = pl.program_id(1)          # query-tile index within this batch element
    S = x_ref.shape[1]
    D = x_ref.shape[2]
    hd = D // n_heads
    scale = float(hd) ** -0.5
    bf16 = jnp.bfloat16

    g1 = g1_ref[...]
    be1 = be1_ref[...]

    # ---- once per batch element: project K/V over the full sequence -----------
    @pl.when(qi == 0)
    def _():
        xn = _layernorm(x_ref[0], g1, be1).astype(bf16)                     # (S, D)
        k_all = jnp.dot(xn, wk_ref[...], preferred_element_type=jnp.float32)
        v_all = jnp.dot(xn, wv_ref[...], preferred_element_type=jnp.float32)
        for h in range(n_heads):              # cheap per-head slice copies only
            k_scr[h] = k_all[:, h * hd:(h + 1) * hd].astype(bf16)
            v_scr[h] = v_all[:, h * hd:(h + 1) * hd].astype(bf16)

    # ---- per query tile --------------------------------------------------------
    row0 = pl.multiple_of(qi * tq, tq)
    xt = x_ref[0, pl.ds(row0, tq), :].astype(jnp.float32)                   # (TQ, D)
    xtn = _layernorm(xt, g1, be1).astype(bf16)
    q_all = jnp.dot(xtn, wq_ref[...], preferred_element_type=jnp.float32)   # (TQ, D)
    for h in range(n_heads):
        q_scr[h] = q_all[:, h * hd:(h + 1) * hd].astype(bf16)

    # Attention, batched over heads (H is the batch dim of a single dot_general).
    s = jnp.einsum('hqd,hkd->hqk', q_scr[...], k_scr[...],
                   preferred_element_type=jnp.float32) * scale              # (H,TQ,S)
    # TODO(synk): boolean attention mask (attn[~mask] = -1e9) not wired; mask=None path only.
    s = s - jnp.max(s, axis=-1, keepdims=True)
    p = jnp.exp(s)
    p = p * pl.reciprocal(jnp.sum(p, axis=-1, keepdims=True), approx=True)
    ho = jnp.einsum('hqk,hkd->hqd', p.astype(bf16), v_scr[...],
                    preferred_element_type=jnp.float32)                     # (H,TQ,hd)
    for h in range(n_heads):                   # merge heads into a lane-dense slab
        attn_scr[:, h * hd:(h + 1) * hd] = ho[h]

    x1 = xt + attn_scr[...]                    # residual 1 (f32, dropout = identity)

    # ---- pre-norm 2 + FFN: Linear -> GELU(exact) -> Linear ---------------------
    xn2 = _layernorm(x1, g2_ref[...], be2_ref[...]).astype(bf16)
    h1 = jnp.dot(xn2, w1_ref[...], preferred_element_type=jnp.float32) + bb1_ref[...]
    g = _gelu_exact(h1)
    h2 = jnp.dot(g.astype(bf16), w2_ref[...],
                 preferred_element_type=jnp.float32) + bb2_ref[...]

    o_ref[0] = (x1 + h2).astype(o_ref.dtype)   # residual 2


def _pick_tile(s):
    for t in (256, 128):
        if s % t == 0:
            return t
    return s  # small / odd sequences: single tile (block == full dim is legal)


def mha_encoder(x, params, n_heads):
    B, S, D = x.shape
    assert D % n_heads == 0
    hd = D // n_heads
    wqkv = params["wqkv"]
    assert wqkv.shape == (D, 3 * D)

    TQ = _pick_tile(S)
    NQ = S // TQ

    bf16 = jnp.bfloat16
    # qkv weight columns are laid out (k=3, h, d): split into per-projection
    # matrices host-side (free) and cast all weights to bf16 so only bf16 weight
    # copies are staged in VMEM (halves weight DMA/VMEM footprint).
    wq = wqkv[:, 0 * D:1 * D].astype(bf16)
    wk = wqkv[:, 1 * D:2 * D].astype(bf16)
    wv = wqkv[:, 2 * D:3 * D].astype(bf16)
    w1 = params["w1"].astype(bf16)
    w2 = params["w2"].astype(bf16)
    g1, be1 = params["g1"], params["be1"]
    bb1, bb2 = params["bb1"], params["bb2"]
    g2, be2 = params["g2"], params["be2"]

    def const_spec(a):  # whole array, same block every grid step (no re-DMA)
        return pl.BlockSpec(a.shape, lambda b, q: (0, 0))

    x_spec = pl.BlockSpec((1, S, D), lambda b, q: (b, 0, 0))   # full sequence per batch
    o_spec = pl.BlockSpec((1, TQ, D), lambda b, q: (b, q, 0))  # lane-dense query tile

    consts = (wq, wk, wv, g1, be1, w1, bb1, w2, bb2, g2, be2)
    in_specs = [x_spec] + [const_spec(a) for a in consts]

    kernel = functools.partial(_mha_encoder_kernel, n_heads=n_heads, tq=TQ)
    return pl.pallas_call(
        kernel,
        out_shape=jax.ShapeDtypeStruct((B, S, D), x.dtype),
        grid_spec=pltpu.PrefetchScalarGridSpec(
            num_scalar_prefetch=0,
            grid=(B, NQ),
            in_specs=in_specs,
            out_specs=o_spec,
            scratch_shapes=[
                pltpu.VMEM((n_heads, S, hd), bf16),    # K (all heads, carried over q tiles)
                pltpu.VMEM((n_heads, S, hd), bf16),    # V
                pltpu.VMEM((n_heads, TQ, hd), bf16),   # Q (current query tile)
                pltpu.VMEM((TQ, D), jnp.float32),      # merged attention output slab
            ],
        ),
        compiler_params=pltpu.CompilerParams(
            dimension_semantics=("parallel", "arbitrary"),
            vmem_limit_bytes=48 * 1024 * 1024,
        ),
    )(x, *consts)


def reference(x, params, n_heads):
    """Pure-JAX f32 reproduction of the PyTorch forward (eval mode)."""
    B, S, D = x.shape
    hd = D // n_heads

    def ln(y, g, b):
        mu = jnp.mean(y, -1, keepdims=True)
        var = jnp.mean((y - mu) ** 2, -1, keepdims=True)
        return (y - mu) / jnp.sqrt(var + LN_EPS) * g + b

    xn = ln(x, params["g1"][0], params["be1"][0])
    qkv = (xn @ params["wqkv"]).reshape(B, S, 3, n_heads, hd)
    q, k, v = qkv[:, :, 0], qkv[:, :, 1], qkv[:, :, 2]
    attn = jnp.einsum('bshd,bthd->bsht', q, k) * (hd ** -0.5)
    attn = jax.nn.softmax(attn, axis=-1)
    ret = jnp.einsum('bshd,bths->bthd', v, attn).reshape(B, S, D)
    x1 = x + ret

    xn2 = ln(x1, params["g2"][0], params["be2"][0])
    h1 = xn2 @ params["w1"] + params["bb1"][0]
    g = 0.5 * h1 * (1.0 + lax.erf(h1 / jnp.sqrt(2.0)))   # exact GELU
    h2 = g @ params["w2"] + params["bb2"][0]
    return x1 + h2


def _make_params(key, D, M):
    kq, k1, kb1, k2, kb2, kg1, kbe1, kg2, kbe2 = jax.random.split(key, 9)
    return {
        "wqkv": 0.02 * jax.random.normal(kq, (D, 3 * D), jnp.float32),   # qkv (bias=False)
        "g1":  1.0 + 0.1 * jax.random.normal(kg1, (1, D), jnp.float32),  # LayerNorm-1
        "be1": 0.02 * jax.random.normal(kbe1, (1, D), jnp.float32),
        "w1":  0.02 * jax.random.normal(k1, (D, M), jnp.float32),        # FFN linear 1
        "bb1": 0.01 * jax.random.normal(kb1, (1, M), jnp.float32),
        "w2":  0.02 * jax.random.normal(k2, (M, D), jnp.float32),        # FFN linear 2
        "bb2": 0.01 * jax.random.normal(kb2, (1, D), jnp.float32),
        "g2":  1.0 + 0.1 * jax.random.normal(kg2, (1, D), jnp.float32),  # LayerNorm-2
        "be2": 0.02 * jax.random.normal(kbe2, (1, D), jnp.float32),
    }


if __name__ == "__main__":
    key = jax.random.PRNGKey(0)

    # (B, S, D, H, mlp): small default config + a multi-tile config that exercises
    # the (batch, query-tile) grid and the per-batch K/V scratch carry.
    configs = [(2, 8, 32, 4, 64), (2, 512, 128, 4, 256)]
    for (B, S, D, H, M) in configs:
        key, kx, kp = jax.random.split(key, 3)
        x = jax.random.normal(kx, (B, S, D), jnp.float32)
        params = _make_params(kp, D, M)

        out = mha_encoder(x, params, n_heads=H)
        jax.block_until_ready(out)

        ref = reference(x, params, n_heads=H)
        assert out.shape == (B, S, D)
        # bf16 MXU operands + approx softmax reciprocal => ~1e-3 abs error vs the
        # pure-f32 reference; 1e-2 tolerance gives comfortable margin.
        np.testing.assert_allclose(np.asarray(out), np.asarray(ref),
                                   rtol=1e-2, atol=1e-2)
    print("KERNEL_OK")
</pallas_src>

<mosaic_0001>
module attributes {stable_mosaic.version = 11 : i64} {
  func.func @_mha_encoder_kernel(%arg0: i32, %arg1: i32, %arg2: memref<1x8x32xf32, #tpu.memory_space<vmem>>, %arg3: memref<32x32xbf16, #tpu.memory_space<vmem>>, %arg4: memref<32x32xbf16, #tpu.memory_space<vmem>>, %arg5: memref<32x32xbf16, #tpu.memory_space<vmem>>, %arg6: memref<1x32xf32, #tpu.memory_space<vmem>>, %arg7: memref<1x32xf32, #tpu.memory_space<vmem>>, %arg8: memref<32x64xbf16, #tpu.memory_space<vmem>>, %arg9: memref<1x64xf32, #tpu.memory_space<vmem>>, %arg10: memref<64x32xbf16, #tpu.memory_space<vmem>>, %arg11: memref<1x32xf32, #tpu.memory_space<vmem>>, %arg12: memref<1x32xf32, #tpu.memory_space<vmem>>, %arg13: memref<1x32xf32, #tpu.memory_space<vmem>>, %arg14: memref<1x8x32xf32, #tpu.memory_space<vmem>>, %arg15: memref<4x8x8xbf16, #tpu.memory_space<vmem>>, %arg16: memref<4x8x8xbf16, #tpu.memory_space<vmem>>, %arg17: memref<4x8x8xbf16, #tpu.memory_space<vmem>>, %arg18: memref<8x32xf32, #tpu.memory_space<vmem>>) attributes {dimension_semantics = [#tpu.dimension_semantics<parallel>, #tpu.dimension_semantics<arbitrary>], iteration_bounds = array<i64: 2, 1>, scalar_prefetch = 0 : i64, scratch_operands = 4 : i64, tpu.core_type = #tpu.core_type<tc>, window_params = [{transform_indices = @transform_0, window_bounds = array<i64: 1, 8, 32>}, {pipeline_mode = #tpu.pipeline_mode<synchronous>, transform_indices = @transform_1, window_bounds = array<i64: 32, 32>}, {pipeline_mode = #tpu.pipeline_mode<synchronous>, transform_indices = @transform_2, window_bounds = array<i64: 32, 32>}, {pipeline_mode = #tpu.pipeline_mode<synchronous>, transform_indices = @transform_3, window_bounds = array<i64: 32, 32>}, {pipeline_mode = #tpu.pipeline_mode<synchronous>, transform_indices = @transform_4, window_bounds = array<i64: 1, 32>}, {pipeline_mode = #tpu.pipeline_mode<synchronous>, transform_indices = @transform_5, window_bounds = array<i64: 1, 32>}, {pipeline_mode = #tpu.pipeline_mode<synchronous>, transform_indices = @transform_6, window_bounds = array<i64: 32, 64>}, {pipeline_mode = #tpu.pipeline_mode<synchronous>, transform_indices = @transform_7, window_bounds = array<i64: 1, 64>}, {pipeline_mode = #tpu.pipeline_mode<synchronous>, transform_indices = @transform_8, window_bounds = array<i64: 64, 32>}, {pipeline_mode = #tpu.pipeline_mode<synchronous>, transform_indices = @transform_9, window_bounds = array<i64: 1, 32>}, {pipeline_mode = #tpu.pipeline_mode<synchronous>, transform_indices = @transform_10, window_bounds = array<i64: 1, 32>}, {pipeline_mode = #tpu.pipeline_mode<synchronous>, transform_indices = @transform_11, window_bounds = array<i64: 1, 32>}, {transform_indices = @transform_12, window_bounds = array<i64: 1, 8, 32>}]} {
    %c0 = arith.constant 0 : index
    %c0_0 = arith.constant 0 : index
    %0 = vector.load %arg6[%c0, %c0_0] : memref<1x32xf32, #tpu.memory_space<vmem>>, vector<1x32xf32>
    %c0_1 = arith.constant 0 : index
    %c0_2 = arith.constant 0 : index
    %1 = vector.load %arg7[%c0_1, %c0_2] : memref<1x32xf32, #tpu.memory_space<vmem>>, vector<1x32xf32>
    %c0_i32 = arith.constant 0 : i32
    %2 = arith.cmpi eq, %arg1, %c0_i32 : i32
    %3 = arith.extui %2 : i1 to i32
    %c0_i32_3 = arith.constant 0 : i32
    %4 = arith.cmpi ne, %3, %c0_i32_3 : i32
    scf.if %4 {
      %c0_81 = arith.constant 0 : index
      %c0_82 = arith.constant 0 : index
      %c0_83 = arith.constant 0 : index
      %168 = vector.load %arg2[%c0_81, %c0_82, %c0_83] : memref<1x8x32xf32, #tpu.memory_space<vmem>>, vector<1x8x32xf32>
      %169 = vector.shape_cast %168 : vector<1x8x32xf32> to vector<8x32xf32>
      %cst_84 = arith.constant dense<0.000000e+00> : vector<8xf32>
      %170 = vector.multi_reduction <add>, %169, %cst_84 [1] : vector<8x32xf32> to vector<8xf32>
      %171 = vector.shape_cast %170 : vector<8xf32> to vector<8x1xf32>
      %cst_85 = arith.constant 3.200000e+01 : f32
      %172 = vector.broadcast %cst_85 : f32 to vector<8x1xf32>
      %173 = arith.divf %171, %172 : vector<8x1xf32>
      %174 = vector.broadcast %173 : vector<8x1xf32> to vector<8x32xf32>
      %175 = arith.subf %169, %174 : vector<8x32xf32>
      %176 = arith.mulf %175, %175 : vector<8x32xf32>
      %cst_86 = arith.constant dense<0.000000e+00> : vector<8xf32>
      %177 = vector.multi_reduction <add>, %176, %cst_86 [1] : vector<8x32xf32> to vector<8xf32>
      %178 = vector.shape_cast %177 : vector<8xf32> to vector<8x1xf32>
      %cst_87 = arith.constant 3.200000e+01 : f32
      %179 = vector.broadcast %cst_87 : f32 to vector<8x1xf32>
      %180 = arith.divf %178, %179 : vector<8x1xf32>
      %181 = vector.broadcast %173 : vector<8x1xf32> to vector<8x32xf32>
      %182 = arith.subf %169, %181 : vector<8x32xf32>
      %cst_88 = arith.constant 9.99999974E-6 : f32
      %183 = vector.broadcast %cst_88 : f32 to vector<8x1xf32>
      %184 = arith.addf %180, %183 : vector<8x1xf32>
      %185 = math.rsqrt %184 : vector<8x1xf32>
      %186 = vector.broadcast %185 : vector<8x1xf32> to vector<8x32xf32>
      %187 = arith.mulf %182, %186 : vector<8x32xf32>
      %188 = vector.broadcast %0 : vector<1x32xf32> to vector<8x32xf32>
      %189 = arith.mulf %187, %188 : vector<8x32xf32>
      %190 = vector.broadcast %1 : vector<1x32xf32> to vector<8x32xf32>
      %191 = arith.addf %189, %190 : vector<8x32xf32>
      %192 = arith.truncf %191 : vector<8x32xf32> to vector<8x32xbf16>
      %c0_89 = arith.constant 0 : index
      %c0_90 = arith.constant 0 : index
      %193 = vector.load %arg4[%c0_89, %c0_90] : memref<32x32xbf16, #tpu.memory_space<vmem>>, vector<32x32xbf16>
      %cst_91 = arith.constant dense<0.000000e+00> : vector<8x32xf32>
      %194 = tpu.matmul %192, %193, %cst_91 {dimension_numbers = #tpu.dot_dimension_numbers<[1], [0], [0], [1], [0, 0, 1, 1], [], []>} : vector<8x32xbf16>, vector<32x32xbf16>, vector<8x32xf32> -> vector<8x32xf32>
      %c0_92 = arith.constant 0 : index
      %c0_93 = arith.constant 0 : index
      %195 = vector.load %arg5[%c0_92, %c0_93] : memref<32x32xbf16, #tpu.memory_space<vmem>>, vector<32x32xbf16>
      %cst_94 = arith.constant dense<0.000000e+00> : vector<8x32xf32>
      %196 = tpu.matmul %192, %195, %cst_94 {dimension_numbers = #tpu.dot_dimension_numbers<[1], [0], [0], [1], [0, 0, 1, 1], [], []>} : vector<8x32xbf16>, vector<32x32xbf16>, vector<8x32xf32> -> vector<8x32xf32>
      %197 = vector.extract_strided_slice %194 {offsets = [0, 0], sizes = [8, 8], strides = [1, 1]} : vector<8x32xf32> to vector<8x8xf32>
      %198 = arith.truncf %197 : vector<8x8xf32> to vector<8x8xbf16>
      %c0_95 = arith.constant 0 : index
      %c0_96 = arith.constant 0 : index
      %c0_97 = arith.constant 0 : index
      %199 = vector.load %arg15[%c0_95, %c0_96, %c0_97] : memref<4x8x8xbf16, #tpu.memory_space<vmem>>, vector<1x8x8xbf16>
      %200 = vector.shape_cast %199 : vector<1x8x8xbf16> to vector<8x8xbf16>
      %201 = vector.shape_cast %198 : vector<8x8xbf16> to vector<1x8x8xbf16>
      tpu.vector_store %arg15[%c0_95, %c0_96, %c0_97], %201 {strides = array<i32>} : memref<4x8x8xbf16, #tpu.memory_space<vmem>>, vector<1x8x8xbf16>,
      %202 = vector.extract_strided_slice %196 {offsets = [0, 0], sizes = [8, 8], strides = [1, 1]} : vector<8x32xf32> to vector<8x8xf32>
      %203 = arith.truncf %202 : vector<8x8xf32> to vector<8x8xbf16>
      %c0_98 = arith.constant 0 : index
      %c0_99 = arith.constant 0 : index
      %c0_100 = arith.constant 0 : index
      %204 = vector.load %arg16[%c0_98, %c0_99, %c0_100] : memref<4x8x8xbf16, #tpu.memory_space<vmem>>, vector<1x8x8xbf16>
      %205 = vector.shape_cast %204 : vector<1x8x8xbf16> to vector<8x8xbf16>
      %206 = vector.shape_cast %203 : vector<8x8xbf16> to vector<1x8x8xbf16>
      tpu.vector_store %arg16[%c0_98, %c0_99, %c0_100], %206 {strides = array<i32>} : memref<4x8x8xbf16, #tpu.memory_space<vmem>>, vector<1x8x8xbf16>,
      %207 = vector.extract_strided_slice %194 {offsets = [0, 8], sizes = [8, 8], strides = [1, 1]} : vector<8x32xf32> to vector<8x8xf32>
      %208 = arith.truncf %207 : vector<8x8xf32> to vector<8x8xbf16>
      %c1_101 = arith.constant 1 : index
      %c0_102 = arith.constant 0 : index
      %c0_103 = arith.constant 0 : index
      %209 = vector.load %arg15[%c1_101, %c0_102, %c0_103] : memref<4x8x8xbf16, #tpu.memory_space<vmem>>, vector<1x8x8xbf16>
      %210 = vector.shape_cast %209 : vector<1x8x8xbf16> to vector<8x8xbf16>
      %211 = vector.shape_cast %208 : vector<8x8xbf16> to vector<1x8x8xbf16>
      tpu.vector_store %arg15[%c1_101, %c0_102, %c0_103], %211 {strides = array<i32>} : memref<4x8x8xbf16, #tpu.memory_space<vmem>>, vector<1x8x8xbf16>,
      %212 = vector.extract_strided_slice %196 {offsets = [0, 8], sizes = [8, 8], strides = [1, 1]} : vector<8x32xf32> to vector<8x8xf32>
      %213 = arith.truncf %212 : vector<8x8xf32> to vector<8x8xbf16>
      %c1_104 = arith.constant 1 : index
      %c0_105 = arith.constant 0 : index
      %c0_106 = arith.constant 0 : index
      %214 = vector.load %arg16[%c1_104, %c0_105, %c0_106] : memref<4x8x8xbf16, #tpu.memory_space<vmem>>, vector<1x8x8xbf16>
      %215 = vector.shape_cast %214 : vector<1x8x8xbf16> to vector<8x8xbf16>
      %216 = vector.shape_cast %213 : vector<8x8xbf16> to vector<1x8x8xbf16>
      tpu.vector_store %arg16[%c1_104, %c0_105, %c0_106], %216 {strides = array<i32>} : memref<4x8x8xbf16, #tpu.memory_space<vmem>>, vector<1x8x8xbf16>,
      %217 = vector.extract_strided_slice %194 {offsets = [0, 16], sizes = [8, 8], strides = [1, 1]} : vector<8x32xf32> to vector<8x8xf32>
      %218 = arith.truncf %217 : vector<8x8xf32> to vector<8x8xbf16>
      %c2_107 = arith.constant 2 : index
      %c0_108 = arith.constant 0 : index
      %c0_109 = arith.constant 0 : index
      %219 = vector.load %arg15[%c2_107, %c0_108, %c0_109] : memref<4x8x8xbf16, #tpu.memory_space<vmem>>, vector<1x8x8xbf16>
      %220 = vector.shape_cast %219 : vector<1x8x8xbf16> to vector<8x8xbf16>
      %221 = vector.shape_cast %218 : vector<8x8xbf16> to vector<1x8x8xbf16>
      tpu.vector_store %arg15[%c2_107, %c0_108, %c0_109], %221 {strides = array<i32>} : memref<4x8x8xbf16, #tpu.memory_space<vmem>>, vector<1x8x8xbf16>,
      %222 = vector.extract_strided_slice %196 {offsets = [0, 16], sizes = [8, 8], strides = [1, 1]} : vector<8x32xf32> to vector<8x8xf32>
      %223 = arith.truncf %222 : vector<8x8xf32> to vector<8x8xbf16>
      %c2_110 = arith.constant 2 : index
      %c0_111 = arith.constant 0 : index
      %c0_112 = arith.constant 0 : index
      %224 = vector.load %arg16[%c2_110, %c0_111, %c0_112] : memref<4x8x8xbf16, #tpu.memory_space<vmem>>, vector<1x8x8xbf16>
      %225 = vector.shape_cast %224 : vector<1x8x8xbf16> to vector<8x8xbf16>
      %226 = vector.shape_cast %223 : vector<8x8xbf16> to vector<1x8x8xbf16>
      tpu.vector_store %arg16[%c2_110, %c0_111, %c0_112], %226 {strides = array<i32>} : memref<4x8x8xbf16, #tpu.memory_space<vmem>>, vector<1x8x8xbf16>,
      %227 = vector.extract_strided_slice %194 {offsets = [0, 24], sizes = [8, 8], strides = [1, 1]} : vector<8x32xf32> to vector<8x8xf32>
      %228 = arith.truncf %227 : vector<8x8xf32> to vector<8x8xbf16>
      %c3_113 = arith.constant 3 : index
      %c0_114 = arith.constant 0 : index
      %c0_115 = arith.constant 0 : index
      %229 = vector.load %arg15[%c3_113, %c0_114, %c0_115] : memref<4x8x8xbf16, #tpu.memory_space<vmem>>, vector<1x8x8xbf16>
      %230 = vector.shape_cast %229 : vector<1x8x8xbf16> to vector<8x8xbf16>
      %231 = vector.shape_cast %228 : vector<8x8xbf16> to vector<1x8x8xbf16>
      tpu.vector_store %arg15[%c3_113, %c0_114, %c0_115], %231 {strides = array<i32>} : memref<4x8x8xbf16, #tpu.memory_space<vmem>>, vector<1x8x8xbf16>,
      %232 = vector.extract_strided_slice %196 {offsets = [0, 24], sizes = [8, 8], strides = [1, 1]} : vector<8x32xf32> to vector<8x8xf32>
      %233 = arith.truncf %232 : vector<8x8xf32> to vector<8x8xbf16>
      %c3_116 = arith.constant 3 : index
      %c0_117 = arith.constant 0 : index
      %c0_118 = arith.constant 0 : index
      %234 = vector.load %arg16[%c3_116, %c0_117, %c0_118] : memref<4x8x8xbf16, #tpu.memory_space<vmem>>, vector<1x8x8xbf16>
      %235 = vector.shape_cast %234 : vector<1x8x8xbf16> to vector<8x8xbf16>
      %236 = vector.shape_cast %233 : vector<8x8xbf16> to vector<1x8x8xbf16>
      tpu.vector_store %arg16[%c3_116, %c0_117, %c0_118], %236 {strides = array<i32>} : memref<4x8x8xbf16, #tpu.memory_space<vmem>>, vector<1x8x8xbf16>,
    } else {
    }
    %c8_i32 = arith.constant 8 : i32
    %5 = arith.muli %arg1, %c8_i32 : i32
    %6 = tpu.assume_multiple %5, 8 : i32
    %c0_4 = arith.constant 0 : index
    %7 = arith.index_cast %6 : i32 to index
    %c0_5 = arith.constant 0 : index
    %8 = vector.load %arg2[%c0_4, %7, %c0_5] : memref<1x8x32xf32, #tpu.memory_space<vmem>>, vector<1x8x32xf32>
    %9 = vector.shape_cast %8 : vector<1x8x32xf32> to vector<8x32xf32>
    %cst = arith.constant dense<0.000000e+00> : vector<8xf32>
    %10 = vector.multi_reduction <add>, %9, %cst [1] : vector<8x32xf32> to vector<8xf32>
    %11 = vector.shape_cast %10 : vector<8xf32> to vector<8x1xf32>
    %cst_6 = arith.constant 3.200000e+01 : f32
    %12 = vector.broadcast %cst_6 : f32 to vector<8x1xf32>
    %13 = arith.divf %11, %12 : vector<8x1xf32>
    %14 = vector.broadcast %13 : vector<8x1xf32> to vector<8x32xf32>
    %15 = arith.subf %9, %14 : vector<8x32xf32>
    %16 = arith.mulf %15, %15 : vector<8x32xf32>
    %cst_7 = arith.constant dense<0.000000e+00> : vector<8xf32>
    %17 = vector.multi_reduction <add>, %16, %cst_7 [1] : vector<8x32xf32> to vector<8xf32>
    %18 = vector.shape_cast %17 : vector<8xf32> to vector<8x1xf32>
    %cst_8 = arith.constant 3.200000e+01 : f32
    %19 = vector.broadcast %cst_8 : f32 to vector<8x1xf32>
    %20 = arith.divf %18, %19 : vector<8x1xf32>
    %21 = vector.broadcast %13 : vector<8x1xf32> to vector<8x32xf32>
    %22 = arith.subf %9, %21 : vector<8x32xf32>
    %cst_9 = arith.constant 9.99999974E-6 : f32
    %23 = vector.broadcast %cst_9 : f32 to vector<8x1xf32>
    %24 = arith.addf %20, %23 : vector<8x1xf32>
    %25 = math.rsqrt %24 : vector<8x1xf32>
    %26 = vector.broadcast %25 : vector<8x1xf32> to vector<8x32xf32>
    %27 = arith.mulf %22, %26 : vector<8x32xf32>
    %28 = vector.broadcast %0 : vector<1x32xf32> to vector<8x32xf32>
    %29 = arith.mulf %27, %28 : vector<8x32xf32>
    %30 = vector.broadcast %1 : vector<1x32xf32> to vector<8x32xf32>
    %31 = arith.addf %29, %30 : vector<8x32xf32>
    %32 = arith.truncf %31 : vector<8x32xf32> to vector<8x32xbf16>
    %c0_10 = arith.constant 0 : index
    %c0_11 = arith.constant 0 : index
    %33 = vector.load %arg3[%c0_10, %c0_11] : memref<32x32xbf16, #tpu.memory_space<vmem>>, vector<32x32xbf16>
    %cst_12 = arith.constant dense<0.000000e+00> : vector<8x32xf32>
    %34 = tpu.matmul %32, %33, %cst_12 {dimension_numbers = #tpu.dot_dimension_numbers<[1], [0], [0], [1], [0, 0, 1, 1], [], []>} : vector<8x32xbf16>, vector<32x32xbf16>, vector<8x32xf32> -> vector<8x32xf32>
    %35 = vector.extract_strided_slice %34 {offsets = [0, 0], sizes = [8, 8], strides = [1, 1]} : vector<8x32xf32> to vector<8x8xf32>
    %36 = arith.truncf %35 : vector<8x8xf32> to vector<8x8xbf16>
    %c0_13 = arith.constant 0 : index
    %c0_14 = arith.constant 0 : index
    %c0_15 = arith.constant 0 : index
    %37 = vector.load %arg17[%c0_13, %c0_14, %c0_15] : memref<4x8x8xbf16, #tpu.memory_space<vmem>>, vector<1x8x8xbf16>
    %38 = vector.shape_cast %37 : vector<1x8x8xbf16> to vector<8x8xbf16>
    %39 = vector.shape_cast %36 : vector<8x8xbf16> to vector<1x8x8xbf16>
    tpu.vector_store %arg17[%c0_13, %c0_14, %c0_15], %39 {strides = array<i32>} : memref<4x8x8xbf16, #tpu.memory_space<vmem>>, vector<1x8x8xbf16>,
    %40 = vector.extract_strided_slice %34 {offsets = [0, 8], sizes = [8, 8], strides = [1, 1]} : vector<8x32xf32> to vector<8x8xf32>
    %41 = arith.truncf %40 : vector<8x8xf32> to vector<8x8xbf16>
    %c1 = arith.constant 1 : index
    %c0_16 = arith.constant 0 : index
    %c0_17 = arith.constant 0 : index
    %42 = vector.load %arg17[%c1, %c0_16, %c0_17] : memref<4x8x8xbf16, #tpu.memory_space<vmem>>, vector<1x8x8xbf16>
    %43 = vector.shape_cast %42 : vector<1x8x8xbf16> to vector<8x8xbf16>
    %44 = vector.shape_cast %41 : vector<8x8xbf16> to vector<1x8x8xbf16>
    tpu.vector_store %arg17[%c1, %c0_16, %c0_17], %44 {strides = array<i32>} : memref<4x8x8xbf16, #tpu.memory_space<vmem>>, vector<1x8x8xbf16>,
    %45 = vector.extract_strided_slice %34 {offsets = [0, 16], sizes = [8, 8], strides = [1, 1]} : vector<8x32xf32> to vector<8x8xf32>
    %46 = arith.truncf %45 : vector<8x8xf32> to vector<8x8xbf16>
    %c2 = arith.constant 2 : index
    %c0_18 = arith.constant 0 : index
    %c0_19 = arith.constant 0 : index
    %47 = vector.load %arg17[%c2, %c0_18, %c0_19] : memref<4x8x8xbf16, #tpu.memory_space<vmem>>, vector<1x8x8xbf16>
    %48 = vector.shape_cast %47 : vector<1x8x8xbf16> to vector<8x8xbf16>
    %49 = vector.shape_cast %46 : vector<8x8xbf16> to vector<1x8x8xbf16>
    tpu.vector_store %arg17[%c2, %c0_18, %c0_19], %49 {strides = array<i32>} : memref<4x8x8xbf16, #tpu.memory_space<vmem>>, vector<1x8x8xbf16>,
    %50 = vector.extract_strided_slice %34 {offsets = [0, 24], sizes = [8, 8], strides = [1, 1]} : vector<8x32xf32> to vector<8x8xf32>
    %51 = arith.truncf %50 : vector<8x8xf32> to vector<8x8xbf16>
    %c3 = arith.constant 3 : index
    %c0_20 = arith.constant 0 : index
    %c0_21 = arith.constant 0 : index
    %52 = vector.load %arg17[%c3, %c0_20, %c0_21] : memref<4x8x8xbf16, #tpu.memory_space<vmem>>, vector<1x8x8xbf16>
    %53 = vector.shape_cast %52 : vector<1x8x8xbf16> to vector<8x8xbf16>
    %54 = vector.shape_cast %51 : vector<8x8xbf16> to vector<1x8x8xbf16>
    tpu.vector_store %arg17[%c3, %c0_20, %c0_21], %54 {strides = array<i32>} : memref<4x8x8xbf16, #tpu.memory_space<vmem>>, vector<1x8x8xbf16>,
    %c0_22 = arith.constant 0 : index
    %c0_23 = arith.constant 0 : index
    %c0_24 = arith.constant 0 : index
    %55 = vector.load %arg17[%c0_22, %c0_23, %c0_24] : memref<4x8x8xbf16, #tpu.memory_space<vmem>>, vector<4x8x8xbf16>
    %c0_25 = arith.constant 0 : index
    %c0_26 = arith.constant 0 : index
    %c0_27 = arith.constant 0 : index
    %56 = vector.load %arg15[%c0_25, %c0_26, %c0_27] : memref<4x8x8xbf16, #tpu.memory_space<vmem>>, vector<4x8x8xbf16>
    "tpu.trace_start"() <{level = 10 : i32, message = "hqd,hkd->hqk"}> : () -> ()
    %cst_28 = arith.constant dense<0.000000e+00> : vector<4x8x8xf32>
    %57 = tpu.matmul %55, %56, %cst_28 {dimension_numbers = #tpu.dot_dimension_numbers<[2], [2], [1], [1], [0, 0, 0, 1, 1, 1], [0], [0]>} : vector<4x8x8xbf16>, vector<4x8x8xbf16>, vector<4x8x8xf32> -> vector<4x8x8xf32>
    "tpu.trace_stop"() : () -> ()
    %cst_29 = arith.constant 0.353553385 : f32
    %58 = vector.broadcast %cst_29 : f32 to vector<4x8x8xf32>
    %59 = arith.mulf %57, %58 : vector<4x8x8xf32>
    %cst_30 = arith.constant dense<0xFF800000> : vector<4x8xf32>
    %60 = vector.multi_reduction <maximumf>, %59, %cst_30 [2] : vector<4x8x8xf32> to vector<4x8xf32>
    %61 = vector.shape_cast %60 : vector<4x8xf32> to vector<4x8x1xf32>
    %62 = vector.broadcast %61 : vector<4x8x1xf32> to vector<4x8x8xf32>
    %63 = arith.subf %59, %62 : vector<4x8x8xf32>
    %64 = math.exp %63 : vector<4x8x8xf32>
    %cst_31 = arith.constant dense<0.000000e+00> : vector<4x8xf32>
    %65 = vector.multi_reduction <add>, %64, %cst_31 [2] : vector<4x8x8xf32> to vector<4x8xf32>
    %66 = vector.shape_cast %65 : vector<4x8xf32> to vector<4x8x1xf32>
    %67 = tpu.reciprocal %66 {approx = true} : vector<4x8x1xf32> -> vector<4x8x1xf32>
    %68 = vector.broadcast %67 : vector<4x8x1xf32> to vector<4x8x8xf32>
    %69 = arith.mulf %64, %68 : vector<4x8x8xf32>
    %70 = arith.truncf %69 : vector<4x8x8xf32> to vector<4x8x8xbf16>
    %c0_32 = arith.constant 0 : index
    %c0_33 = arith.constant 0 : index
    %c0_34 = arith.constant 0 : index
    %71 = vector.load %arg16[%c0_32, %c0_33, %c0_34] : memref<4x8x8xbf16, #tpu.memory_space<vmem>>, vector<4x8x8xbf16>
    "tpu.trace_start"() <{level = 10 : i32, message = "hqk,hkd->hqd"}> : () -> ()
    %cst_35 = arith.constant dense<0.000000e+00> : vector<4x8x8xf32>
    %72 = tpu.matmul %70, %71, %cst_35 {dimension_numbers = #tpu.dot_dimension_numbers<[2], [1], [1], [2], [0, 0, 0, 1, 1, 2], [0], [0]>} : vector<4x8x8xbf16>, vector<4x8x8xbf16>, vector<4x8x8xf32> -> vector<4x8x8xf32>
    "tpu.trace_stop"() : () -> ()
    %73 = vector.extract_strided_slice %72 {offsets = [0, 0, 0], sizes = [1, 8, 8], strides = [1, 1, 1]} : vector<4x8x8xf32> to vector<1x8x8xf32>
    %74 = vector.shape_cast %73 : vector<1x8x8xf32> to vector<8x8xf32>
    %c0_36 = arith.constant 0 : index
    %c0_37 = arith.constant 0 : index
    %75 = vector.load %arg18[%c0_36, %c0_37] : memref<8x32xf32, #tpu.memory_space<vmem>>, vector<8x8xf32>
    tpu.vector_store %arg18[%c0_36, %c0_37], %74 {strides = array<i32>} : memref<8x32xf32, #tpu.memory_space<vmem>>, vector<8x8xf32>,
    %76 = vector.extract_strided_slice %72 {offsets = [1, 0, 0], sizes = [1, 8, 8], strides = [1, 1, 1]} : vector<4x8x8xf32> to vector<1x8x8xf32>
    %77 = vector.shape_cast %76 : vector<1x8x8xf32> to vector<8x8xf32>
    %c0_38 = arith.constant 0 : index
    %c8 = arith.constant 8 : index
    %78 = vector.load %arg18[%c0_38, %c8] : memref<8x32xf32, #tpu.memory_space<vmem>>, vector<8x8xf32>
    tpu.vector_store %arg18[%c0_38, %c8], %77 {strides = array<i32>} : memref<8x32xf32, #tpu.memory_space<vmem>>, vector<8x8xf32>,
    %79 = vector.extract_strided_slice %72 {offsets = [2, 0, 0], sizes = [1, 8, 8], strides = [1, 1, 1]} : vector<4x8x8xf32> to vector<1x8x8xf32>
    %80 = vector.shape_cast %79 : vector<1x8x8xf32> to vector<8x8xf32>
    %c0_39 = arith.constant 0 : index
    %c16 = arith.constant 16 : index
    %81 = vector.load %arg18[%c0_39, %c16] : memref<8x32xf32, #tpu.memory_space<vmem>>, vector<8x8xf32>
    tpu.vector_store %arg18[%c0_39, %c16], %80 {strides = array<i32>} : memref<8x32xf32, #tpu.memory_space<vmem>>, vector<8x8xf32>,
    %82 = vector.extract_strided_slice %72 {offsets = [3, 0, 0], sizes = [1, 8, 8], strides = [1, 1, 1]} : vector<4x8x8xf32> to vector<1x8x8xf32>
    %83 = vector.shape_cast %82 : vector<1x8x8xf32> to vector<8x8xf32>
    %c0_40 = arith.constant 0 : index
    %c24 = arith.constant 24 : index
    %84 = vector.load %arg18[%c0_40, %c24] : memref<8x32xf32, #tpu.memory_space<vmem>>, vector<8x8xf32>
    tpu.vector_store %arg18[%c0_40, %c24], %83 {strides = array<i32>} : memref<8x32xf32, #tpu.memory_space<vmem>>, vector<8x8xf32>,
    %c0_41 = arith.constant 0 : index
    %c0_42 = arith.constant 0 : index
    %85 = vector.load %arg18[%c0_41, %c0_42] : memref<8x32xf32, #tpu.memory_space<vmem>>, vector<8x32xf32>
    %86 = arith.addf %9, %85 : vector<8x32xf32>
    %c0_43 = arith.constant 0 : index
    %c0_44 = arith.constant 0 : index
    %87 = vector.load %arg12[%c0_43, %c0_44] : memref<1x32xf32, #tpu.memory_space<vmem>>, vector<1x32xf32>
    %c0_45 = arith.constant 0 : index
    %c0_46 = arith.constant 0 : index
    %88 = vector.load %arg13[%c0_45, %c0_46] : memref<1x32xf32, #tpu.memory_space<vmem>>, vector<1x32xf32>
    %cst_47 = arith.constant dense<0.000000e+00> : vector<8xf32>
    %89 = vector.multi_reduction <add>, %86, %cst_47 [1] : vector<8x32xf32> to vector<8xf32>
    %90 = vector.shape_cast %89 : vector<8xf32> to vector<8x1xf32>
    %cst_48 = arith.constant 3.200000e+01 : f32
    %91 = vector.broadcast %cst_48 : f32 to vector<8x1xf32>
    %92 = arith.divf %90, %91 : vector<8x1xf32>
    %93 = vector.broadcast %92 : vector<8x1xf32> to vector<8x32xf32>
    %94 = arith.subf %86, %93 : vector<8x32xf32>
    %95 = arith.mulf %94, %94 : vector<8x32xf32>
    %cst_49 = arith.constant dense<0.000000e+00> : vector<8xf32>
    %96 = vector.multi_reduction <add>, %95, %cst_49 [1] : vector<8x32xf32> to vector<8xf32>
    %97 = vector.shape_cast %96 : vector<8xf32> to vector<8x1xf32>
    %cst_50 = arith.constant 3.200000e+01 : f32
    %98 = vector.broadcast %cst_50 : f32 to vector<8x1xf32>
    %99 = arith.divf %97, %98 : vector<8x1xf32>
    %100 = vector.broadcast %92 : vector<8x1xf32> to vector<8x32xf32>
    %101 = arith.subf %86, %100 : vector<8x32xf32>
    %cst_51 = arith.constant 9.99999974E-6 : f32
    %102 = vector.broadcast %cst_51 : f32 to vector<8x1xf32>
    %103 = arith.addf %99, %102 : vector<8x1xf32>
    %104 = math.rsqrt %103 : vector<8x1xf32>
    %105 = vector.broadcast %104 : vector<8x1xf32> to vector<8x32xf32>
    %106 = arith.mulf %101, %105 : vector<8x32xf32>
    %107 = vector.broadcast %87 : vector<1x32xf32> to vector<8x32xf32>
    %108 = arith.mulf %106, %107 : vector<8x32xf32>
    %109 = vector.broadcast %88 : vector<1x32xf32> to vector<8x32xf32>
    %110 = arith.addf %108, %109 : vector<8x32xf32>
    %111 = arith.truncf %110 : vector<8x32xf32> to vector<8x32xbf16>
    %c0_52 = arith.constant 0 : index
    %c0_53 = arith.constant 0 : index
    %112 = vector.load %arg8[%c0_52, %c0_53] : memref<32x64xbf16, #tpu.memory_space<vmem>>, vector<32x64xbf16>
    %cst_54 = arith.constant dense<0.000000e+00> : vector<8x64xf32>
    %113 = tpu.matmul %111, %112, %cst_54 {dimension_numbers = #tpu.dot_dimension_numbers<[1], [0], [0], [1], [0, 0, 1, 1], [], []>} : vector<8x32xbf16>, vector<32x64xbf16>, vector<8x64xf32> -> vector<8x64xf32>
    %c0_55 = arith.constant 0 : index
    %c0_56 = arith.constant 0 : index
    %114 = vector.load %arg9[%c0_55, %c0_56] : memref<1x64xf32, #tpu.memory_space<vmem>>, vector<1x64xf32>
    %115 = vector.broadcast %114 : vector<1x64xf32> to vector<8x64xf32>
    %116 = arith.addf %113, %115 : vector<8x64xf32>
    %cst_57 = arith.constant 5.000000e-01 : f32
    %117 = vector.broadcast %cst_57 : f32 to vector<8x64xf32>
    %118 = arith.mulf %117, %116 : vector<8x64xf32>
    %cst_58 = arith.constant 0.707106769 : f32
    %119 = vector.broadcast %cst_58 : f32 to vector<8x64xf32>
    %120 = arith.mulf %116, %119 : vector<8x64xf32>
    %cst_59 = arith.constant 0.000000e+00 : f32
    %121 = vector.broadcast %cst_59 : f32 to vector<8x64xf32>
    %122 = arith.cmpf oge, %120, %121 : vector<8x64xf32>
    %cst_60 = arith.constant 1.000000e+00 : f32
    %cst_61 = arith.constant -1.000000e+00 : f32
    %123 = vector.broadcast %cst_60 : f32 to vector<8x64xf32>
    %124 = vector.broadcast %cst_61 : f32 to vector<8x64xf32>
    %125 = arith.select %122, %123, %124 : vector<8x64xi1>, vector<8x64xf32>
    %126 = math.absf %120 : vector<8x64xf32>
    %cst_62 = arith.constant 0.327591091 : f32
    %127 = vector.broadcast %cst_62 : f32 to vector<8x64xf32>
    %128 = arith.mulf %127, %126 : vector<8x64xf32>
    %cst_63 = arith.constant 1.000000e+00 : f32
    %129 = vector.broadcast %cst_63 : f32 to vector<8x64xf32>
    %130 = arith.addf %129, %128 : vector<8x64xf32>
    %cst_64 = arith.constant 1.000000e+00 : f32
    %131 = vector.broadcast %cst_64 : f32 to vector<8x64xf32>
    %132 = arith.divf %131, %130 : vector<8x64xf32>
    %cst_65 = arith.constant 1.06140542 : f32
    %133 = vector.broadcast %cst_65 : f32 to vector<8x64xf32>
    %134 = arith.mulf %133, %132 : vector<8x64xf32>
    %cst_66 = arith.constant -1.45315206 : f32
    %135 = vector.broadcast %cst_66 : f32 to vector<8x64xf32>
    %136 = arith.addf %134, %135 : vector<8x64xf32>
    %137 = arith.mulf %136, %132 : vector<8x64xf32>
    %cst_67 = arith.constant 1.42141378 : f32
    %138 = vector.broadcast %cst_67 : f32 to vector<8x64xf32>
    %139 = arith.addf %137, %138 : vector<8x64xf32>
    %140 = arith.mulf %139, %132 : vector<8x64xf32>
    %cst_68 = arith.constant -0.284496725 : f32
    %141 = vector.broadcast %cst_68 : f32 to vector<8x64xf32>
    %142 = arith.addf %140, %141 : vector<8x64xf32>
    %143 = arith.mulf %142, %132 : vector<8x64xf32>
    %cst_69 = arith.constant 0.254829586 : f32
    %144 = vector.broadcast %cst_69 : f32 to vector<8x64xf32>
    %145 = arith.addf %143, %144 : vector<8x64xf32>
    %146 = arith.mulf %145, %132 : vector<8x64xf32>
    %cst_70 = arith.constant 0.000000e+00 : f32
    %147 = vector.broadcast %cst_70 : f32 to vector<8x64xf32>
    %148 = arith.subf %147, %126 : vector<8x64xf32>
    %149 = arith.mulf %148, %126 : vector<8x64xf32>
    %150 = math.exp %149 : vector<8x64xf32>
    %151 = arith.mulf %146, %150 : vector<8x64xf32>
    %cst_71 = arith.constant 1.000000e+00 : f32
    %152 = vector.broadcast %cst_71 : f32 to vector<8x64xf32>
    %153 = arith.subf %152, %151 : vector<8x64xf32>
    %154 = arith.mulf %125, %153 : vector<8x64xf32>
    %cst_72 = arith.constant 1.000000e+00 : f32
    %155 = vector.broadcast %cst_72 : f32 to vector<8x64xf32>
    %156 = arith.addf %155, %154 : vector<8x64xf32>
    %157 = arith.mulf %118, %156 : vector<8x64xf32>
    %158 = arith.truncf %157 : vector<8x64xf32> to vector<8x64xbf16>
    %c0_73 = arith.constant 0 : index
    %c0_74 = arith.constant 0 : index
    %159 = vector.load %arg10[%c0_73, %c0_74] : memref<64x32xbf16, #tpu.memory_space<vmem>>, vector<64x32xbf16>
    %cst_75 = arith.constant dense<0.000000e+00> : vector<8x32xf32>
    %160 = tpu.matmul %158, %159, %cst_75 {dimension_numbers = #tpu.dot_dimension_numbers<[1], [0], [0], [1], [0, 0, 1, 1], [], []>} : vector<8x64xbf16>, vector<64x32xbf16>, vector<8x32xf32> -> vector<8x32xf32>
    %c0_76 = arith.constant 0 : index
    %c0_77 = arith.constant 0 : index
    %161 = vector.load %arg11[%c0_76, %c0_77] : memref<1x32xf32, #tpu.memory_space<vmem>>, vector<1x32xf32>
    %162 = vector.broadcast %161 : vector<1x32xf32> to vector<8x32xf32>
    %163 = arith.addf %160, %162 : vector<8x32xf32>
    %164 = arith.addf %86, %163 : vector<8x32xf32>
    %c0_78 = arith.constant 0 : index
    %c0_79 = arith.constant 0 : index
    %c0_80 = arith.constant 0 : index
    %165 = vector.load %arg14[%c0_78, %c0_79, %c0_80] : memref<1x8x32xf32, #tpu.memory_space<vmem>>, vector<1x8x32xf32>
    %166 = vector.shape_cast %165 : vector<1x8x32xf32> to vector<8x32xf32>
    %167 = vector.shape_cast %164 : vector<8x32xf32> to vector<1x8x32xf32>
    tpu.vector_store %arg14[%c0_78, %c0_79, %c0_80], %167 {strides = array<i32>} : memref<1x8x32xf32, #tpu.memory_space<vmem>>, vector<1x8x32xf32>,
    return
  }
  func.func @transform_0(%arg0: i32, %arg1: i32) -> (i32, i32, i32) {
    %c0_i32 = arith.constant 0 : i32
    %c0_i32_0 = arith.constant 0 : i32
    %c0_i32_1 = arith.constant 0 : i32
    return %arg0, %c0_i32, %c0_i32_0 : i32, i32, i32
  }
  func.func @transform_1(%arg0: i32, %arg1: i32) -> (i32, i32) {
    %c0_i32 = arith.constant 0 : i32
    %c0_i32_0 = arith.constant 0 : i32
    %c0_i32_1 = arith.constant 0 : i32
    return %c0_i32, %c0_i32_0 : i32, i32
  }
  func.func @transform_2(%arg0: i32, %arg1: i32) -> (i32, i32) {
    %c0_i32 = arith.constant 0 : i32
    %c0_i32_0 = arith.constant 0 : i32
    %c0_i32_1 = arith.constant 0 : i32
    return %c0_i32, %c0_i32_0 : i32, i32
  }
  func.func @transform_3(%arg0: i32, %arg1: i32) -> (i32, i32) {
    %c0_i32 = arith.constant 0 : i32
    %c0_i32_0 = arith.constant 0 : i32
    %c0_i32_1 = arith.constant 0 : i32
    return %c0_i32, %c0_i32_0 : i32, i32
  }
  func.func @transform_4(%arg0: i32, %arg1: i32) -> (i32, i32) {
    %c0_i32 = arith.constant 0 : i32
    %c0_i32_0 = arith.constant 0 : i32
    %c0_i32_1 = arith.constant 0 : i32
    return %c0_i32, %c0_i32_0 : i32, i32
  }
  func.func @transform_5(%arg0: i32, %arg1: i32) -> (i32, i32) {
    %c0_i32 = arith.constant 0 : i32
    %c0_i32_0 = arith.constant 0 : i32
    %c0_i32_1 = arith.constant 0 : i32
    return %c0_i32, %c0_i32_0 : i32, i32
  }
  func.func @transform_6(%arg0: i32, %arg1: i32) -> (i32, i32) {
    %c0_i32 = arith.constant 0 : i32
    %c0_i32_0 = arith.constant 0 : i32
    %c0_i32_1 = arith.constant 0 : i32
    return %c0_i32, %c0_i32_0 : i32, i32
  }
  func.func @transform_7(%arg0: i32, %arg1: i32) -> (i32, i32) {
    %c0_i32 = arith.constant 0 : i32
    %c0_i32_0 = arith.constant 0 : i32
    %c0_i32_1 = arith.constant 0 : i32
    return %c0_i32, %c0_i32_0 : i32, i32
  }
  func.func @transform_8(%arg0: i32, %arg1: i32) -> (i32, i32) {
    %c0_i32 = arith.constant 0 : i32
    %c0_i32_0 = arith.constant 0 : i32
    %c0_i32_1 = arith.constant 0 : i32
    return %c0_i32, %c0_i32_0 : i32, i32
  }
  func.func @transform_9(%arg0: i32, %arg1: i32) -> (i32, i32) {
    %c0_i32 = arith.constant 0 : i32
    %c0_i32_0 = arith.constant 0 : i32
    %c0_i32_1 = arith.constant 0 : i32
    return %c0_i32, %c0_i32_0 : i32, i32
  }
  func.func @transform_10(%arg0: i32, %arg1: i32) -> (i32, i32) {
    %c0_i32 = arith.constant 0 : i32
    %c0_i32_0 = arith.constant 0 : i32
    %c0_i32_1 = arith.constant 0 : i32
    return %c0_i32, %c0_i32_0 : i32, i32
  }
  func.func @transform_11(%arg0: i32, %arg1: i32) -> (i32, i32) {
    %c0_i32 = arith.constant 0 : i32
    %c0_i32_0 = arith.constant 0 : i32
    %c0_i32_1 = arith.constant 0 : i32
    return %c0_i32, %c0_i32_0 : i32, i32
  }
  func.func @transform_12(%arg0: i32, %arg1: i32) -> (i32, i32, i32) {
    %c0_i32 = arith.constant 0 : i32
    %c0_i32_0 = arith.constant 0 : i32
    return %arg0, %arg1, %c0_i32 : i32, i32, i32
  }
}

</mosaic_0001>

<bundles_post_ra>
// kernel: tpu_custom_call.1
= control target key start
LH: loop header
LB: loop body
LE: loop exit
PB: predicated region body
PF: predicated region fallthrough
CT: control target
= control target key end

     0   :  { %s2404_s0 = inlined_call_operand.vmem [shape: f32[2,8,32], index: 0, kind: input, shape index: {}]   ;;  %s2405_s1 = inlined_call_operand.vmem [shape: bf16[32,32], index: 1, kind: input, shape index: {}]   ;;  %s2406_s2 = inlined_call_operand.vmem [shape: bf16[32,32], index: 2, kind: input, shape index: {}]   ;;  %s2407_s3 = inlined_call_operand.hbm [shape: bf16[32,32], index: 3, kind: input, shape index: {}]   ;;  %s2408_s4 = inlined_call_operand.vmem [shape: f32[1,32], index: 4, kind: input, shape index: {}]   ;;  %s2409_s5 = inlined_call_operand.vmem [shape: f32[1,32], index: 5, kind: input, shape index: {}]   ;;  %s2410_s6 = inlined_call_operand.hbm [shape: bf16[32,64], index: 6, kind: input, shape index: {}]   ;;  %s2411_s7 = inlined_call_operand.vmem [shape: f32[1,64], index: 7, kind: input, shape index: {}]   ;;  %s2412_s8 = inlined_call_operand.vmem [shape: bf16[64,32], index: 8, kind: input, shape index: {}]   ;;  %s2413_s9 = inlined_call_operand.vmem [shape: f32[1,32], index: 9, kind: input, shape index: {}]   ;;  %s2414_s10 = inlined_call_operand.vmem [shape: f32[1,32], index: 10, kind: input, shape index: {}]   ;;  %s2415_s11 = inlined_call_operand.vmem [shape: f32[1,32], index: 11, kind: input, shape index: {}]   ;;  %s2416_s12 = inlined_call_operand.hbm [shape: f32[2,8,32], index: 12, kind: output, shape index: {}]  }
   0x1   :  { %2429 = sst [smem:[#allocation22_spill]] %s2416_s12 }
   0x2   :  { %17 = vsyncpa [#allocation7], 0 }
   0x3   :  { %18 = vsyncpa [#allocation10], 0 }
   0x4   :  { %19 = vsyncpa [#allocation8], 0 }
   0x5   :  { %21 = vsyncpa [#allocation8 + $0x1], 0  ;;  %s2056_s21 = smov 0   ;;  %s2058_s22 = smov 0  }
   0x6   :  { %s2060_s23 = smov 0   ;;  %s2062_s24 = smov 0  }
   0x7   :  { %s2064_s25 = smov 0   ;;  %s2066_s26 = smov 0  }
   0x8 LB: > { %2430 = sst [smem:[#allocation15_spill]] %s1955_s21  ;;  %s1531_s27 = sadd.s32 4294967295, %s1975_s26   ;;  %s1975_s26 = sphi %s2066_s26, %s27_s26   ;;  %s1971_s25 = sphi %s2064_s25, %s2453_s25   ;;  %s1967_s24 = sphi %s2062_s24, %s2452_s24   ;;  %s1963_s23 = sphi %s2060_s23, %s2451_s23   ;;  %s1959_s22 = sphi %s2058_s22, %s2455_s22   ;;  %s1955_s21 = sphi %s2056_s21, %s2454_s21  }
   0x9   : > { %2431 = sst [smem:[#allocation16_spill]] %s1963_s23  ;;  %s1532_s28 = sadd.s32 4294967294, %s1975_s26  }
   0xa   : > { %2432 = sst [smem:[#allocation17_spill]] %s1971_s25  ;;  %s39_s29 = sadd.s32 1, %s1971_s25 }
   0xb   : > { %2433 = sst [smem:[#allocation18_spill]] %s1975_s26  ;;  %s305_s30 = sadd.s32 1, %s1963_s23 }
   0xc   : > { %p41_p0 = scmp.ge.s32.totalorder %s39_s29, 2  ;;  %p315_p1 = scmp.ne.s32.totalorder %s1963_s23, %s1959_s22 }
   0xd   : > { %p316_p2 = scmp.eq.s32.totalorder %s1531_s27, 1  ;;  %p321_p3 = scmp.ne.s32.totalorder %s1959_s22, %s1955_s21 }
   0xe   : > { %s2457_s29 = smov (%p41_p0, %s39_s29), 0  ;;  %p322_p5 = scmp.eq.s32.totalorder %s1532_s28, 1 }
   0xf   : > { %2434 = sst [smem:[#allocation19_spill]] %s2457_s29  ;;  %p2096_p4 = por %p316_p2, %p315_p1 }
  0x10   : > { %s300_s14 = ssub.s32 %s1971_s25, %s2457_s29  ;;  %p1533_p6 = scmp.ge.s32.totalorder %s1975_s26, 1 }
  0x11   : > { %s2435_s13 = scalar_select %p2096_p4, 1, 0 }
  0x12   : > { %p303_p7 = scmp.eq.s32.totalorder %s300_s14, 0  ;;  %p2103_p8 = por %p322_p5, %p321_p3 }
  0x13   : > { %p329_p9 = scmp.lt.s32.totalorder %s1975_s26, 3  ;;  %p2115_p11 = scmp.eq.s32.totalorder %s1531_s27, 0 }
  0x14   : > { %s2436_s15 = scalar_select %p2103_p8, 1, 0 }
  0x15   : > { %s2109_s16 = scalar_select %p303_p7, %s1963_s23, %s305_s30  }
  0x16   : > { %2437 = sst [smem:[#allocation20_spill]] %s2436_s15  ;;  %p2111_p10 = pnand %p1533_p6, %p329_p9 }
  0x17   : > { %2438 = sst [smem:[#allocation21_spill]] %s2109_s16  ;;  %s1977_s19 = smov [#allocation6]  }
  0x18   : > { %s2439_s17 = scalar_select %p2111_p10, 1, 0 }
  0x19   : > { %s2440_s18 = scalar_select %p2115_p11, 1, 0 }
  0x1a   : > { %p1718_p12 = pneg %p2111_p10  ;;  %s347_s20 = sshll.u32 %s1977_s19, 4  ;;  %s348_s20 = int_to_ptr.vmem [resolvable:$true] %s347_s20 }
  0x1b   : > { %s1978_s30 = smov [#allocation9]   ;;  %s1833_s25 = scalar_lea.hbm %s2407_s3, 256 }
  0x1c   : > { %p2123_p13 = pnand %p2115_p11, %p1718_p12  ;;  %s366_s14 = sshll.u32 %s1978_s30, 4  ;;  %s2127_s14 = int_to_ptr.vmem [resolvable:$true] %s366_s14 }
  0x1d   : > { %p1834_p0 = scmp.ne.s32.totalorder %s2407_s3, %s1833_s25  ;;  %p1840_p5 = scmp.lt.u32.totalorder %s1833_s25, %s2407_s3 }
  0x1e   : > { %p1835_p1 = pneg %p2123_p13 }
  0x20   : > { %p1836_p2 = pnand %p1835_p1, %p1834_p0 }
  0x22   : > { %p1837_p3 = pneg %p1836_p2 }
  0x24   : > { %p1842_p6 = pnand %p1840_p5, %p1837_p3 }
  0x26   : > { %1845 = shalt.err (!%p1842_p6)
}
  0x27   : > { %s1846_s30 = scalar_lea.vmem %s348_s20, 256  ;;  %p1854_p8 = scmp.lt.s32.totalorder %s348_s20, %s348_s20 }
  0x28   : > { %p1847_p7 = scmp.ne.s32.totalorder %s348_s20, %s1846_s30  ;;  %p1855_p4 = scmp.lt.s32.totalorder %s1846_s30, %s1846_s30 }
  0x2a   : > { %p1849_p9 = pnand %p1847_p7, %p1835_p1  ;;  %p1856_p11 = por %p1855_p4, %p1854_p8 }
  0x2c   : > { %p1850_p12 = pneg %p1849_p9 }
  0x2e   : > { %p1857_p10 = pnand %p1856_p11, %p1850_p12 }
  0x30   : > { %1860 = shalt.err (!%p1857_p10)
}
  0x31   : > { %s1979_s23 = smov 64   ;;  %s1980_s29 = smov 4  }
  0x32   : > { %1721 = dma.hbm_to_vmem [thread:$0]  (!%p2123_p13), %s2407_s3, 256, %s348_s20, [#allocation7], %s1979_s23, %s1979_s23, %s1980_s29  }
  0x33   : > { %s1861_s19 = scalar_lea.hbm %s2410_s6, 256 }
  0x34   : > { %p1862_p0 = scmp.ne.s32.totalorder %s2410_s6, %s1861_s19  ;;  %p1868_p10 = scmp.lt.u32.totalorder %s1861_s19, %s2410_s6 }
  0x36   : > { %p1864_p4 = pnand %p1862_p0, %p1835_p1 }
  0x38   : > { %p1865_p8 = pneg %p1864_p4 }
  0x3a   : > { %p1870_p11 = pnand %p1868_p10, %p1865_p8 }
  0x3c   : > { %1873 = shalt.err (!%p1870_p11)
}
  0x3d   : > { %s1874_s20 = scalar_lea.vmem %s2127_s14, 256  ;;  %p1882_p6 = scmp.lt.s32.totalorder %s2127_s14, %s2127_s14 }
  0x3e   : > { %p1875_p2 = scmp.ne.s32.totalorder %s2127_s14, %s1874_s20  ;;  %p1883_p7 = scmp.lt.s32.totalorder %s1874_s20, %s1874_s20 }
  0x40   : > { %p1877_p3 = pnand %p1875_p2, %p1835_p1  ;;  %p1884_p9 = por %p1883_p7, %p1882_p6 }
  0x42   : > { %p1878_p5 = pneg %p1877_p3 }
  0x44   : > { %p1885_p12 = pnand %p1884_p9, %p1878_p5 }
  0x46   : > { %1888 = shalt.err (!%p1885_p12)
}
  0x47   : > { %1724 = dma.hbm_to_vmem [thread:$0]  (!%p2123_p13), %s2410_s6, 256, %s2127_s14, [#allocation10], %s1979_s23, %s1979_s23, %s1980_s29  }
  0x48   : > { %p2442_p0 = scmp.ne.s32.totalorder %s2439_s17, 0 }
  0x49   : > { %p2443_p4 = scmp.ne.s32.totalorder (!%p2442_p0), %s2440_s18, 0 }
  0x4a   : > { %404 = sbr.rel (%p2442_p0) target bundleno = 2480 (0x9b0), region = 68 }
  0x51   : > { %1942 = dma.done.wait (%p2443_p4), [#allocation7], 256  }
  0x52   : > { %1944 = vsyncadd (%p2443_p4), [#allocation7], 4294967040 }
  0x53   : > { %1946 = dma.done.wait (%p2443_p4), [#allocation10], 256  }
  0x54   : > { %1948 = vsyncadd (%p2443_p4), [#allocation10], 4294967040  ;;  %p449_p1 = scmp.lt.s32.totalorder %s1967_s24, 1  ;;  %vm461_vm0 = vcmask 261120   ;;  %v1795_v12 = vld [vmem:[%s2406_s2] sm:$0xff]   ;;  %v1981_v14 = vmov 0.0  }
  0x55   : > { %v1797_v13 = vld [vmem:[%s2405_s1] sm:$0xff]   ;;  %1616 = vmatprep.subr.bf16.mxu1 %v1981_v14  ;;  %1632 = vmatprep.subr.bf16.mxu0 %v1981_v14  ;;  %v1796_v15 = vld [vmem:[%s2406_s2 + $0x8] sm:$0xff]   ;;  %vm1982_vm1 = vmmov 0   ;;  %v1798_v31 = vld [vmem:[#allocation6] sm:$0xff]   ;;  %vm607_vm2 = vcmask 60416   ;;  %s1984_s14 = smov 120  }
  0x56   : > { %s450_s26 = scalar_select %p449_p1, %s1967_s24, 1  ;;  %1617 = vmatpush3.bf16.msra.mxu1 %v1795_v12  ;;  %1633 = vmatpush3.bf16.msra.mxu0 %v1797_v13  ;;  %v1799_v16 = vld [vmem:[%s2405_s1 + $0x8] sm:$0xff]   ;;  %v1581_v24 = vld [vmem:[%s2408_s4] ss:$0 sm:$0xff]  ;;  %vm768_vm3 = vcmask 64512   ;;  %vm1012_vm4 = vcmask 1043456  }
  0x57   : > { %1618 = vmatprep.subr.bf16.mxu1 %v1981_v14  ;;  %1620 = vmatprep.mubr.msk.bf16.mxu1 %vm1982_vm1, %v1981_v14  ;;  %v1582_v26 = vld [vmem:[%s2409_s5] ss:$0 sm:$0xff]  ;;  %s1985_s17 = smov 104   ;;  %s1987_s18 = smov 8   ;;  %vm1199_vm5 = vcmask 130112   ;;  %vm1205_vm6 = vcmask 195712  }
  0x58   : > { %s1541_s28 = sshll.u32 %s450_s26, 3  ;;  %1634 = vmatprep.subr.bf16.mxu0 %v1981_v14  ;;  %1636 = vmatprep.mubr.msk.bf16.mxu0 %vm1982_vm1, %v1981_v14  ;;  %v1800_v35 = vld [vmem:[#allocation6 + $0x8] sm:$0xff]   ;;  %s1988_s29 = smov 24   ;;  %vm1211_vm7 = vcmask 261312   ;;  %vm1378_vm9 = vcmask 523264  }
  0x59   : > { %s452_s23 = scalar_lea.vmem %s2404_s0, %s1541_s28  ;;  %s1983_s28 = smov 112  }
  0x5a   : > { %v2191_v0 = vld [vmem:[%s452_s23] sm:$0xff]  ;;  %1619 = vmatpush3.bf16.msra.mxu1 %v1796_v15  ;;  %1635 = vmatpush3.bf16.msra.mxu0 %v1799_v16  ;;  %s1986_s23 = smov 16   ;;  %s1575_s16 = sshll.u32 %s1967_s24, 7 }
  0x5b   : > { %v462_v1 = vsel %vm461_vm0, %v2191_v0, 0.0  ;;  %1624 = vmatprep.subr.bf16.mxu1 %v1981_v14  ;;  %1646 = vmatprep.subr.bf16.mxu0 %v1981_v14  ;;  %s2444_s12 = sld [smem:[#allocation22_spill]]  ;;  %p2445_p8 = scmp.ne.s32.totalorder %s2435_s13, 0 }
  0x5c   : > { %463 = vadd.xlane.f32.xlu0 %v462_v1 }
  0x60   : > { %652 = vadd.xlane.f32.xlu0 %v462_v1 }
  0x61   : > { %s2356_s21 = scalar_lea.hbm %s2444_s12, %s1575_s16 }
  0xe9   : > { %v464_v2 = vpop.xlane.xlu0 %463 }
  0xea   : > { %v466_v3 = vmul.f32 0.03125, %v464_v2 }
  0xec   : > { %v467_v4 = vsub.f32 %v2191_v0, %v466_v3 }
  0xed   : > { %v653_v5 = vpop.xlane.xlu0 %652 }
  0xee   : > { %v655_v6 = vmul.f32 0.03125, %v653_v5  ;;  %v468_v7 = vmul.f32 %v467_v4, %v467_v4 }
  0xf0   : > { %v656_v8 = vsub.f32 %v2191_v0, %v655_v6  ;;  %v469_v9 = vsel %vm461_vm0, %v468_v7, 0.0 }
  0xf1   : > { %470 = vadd.xlane.f32.xlu1 %v469_v9 }
  0xf2   : > { %v657_v10 = vmul.f32 %v656_v8, %v656_v8 }
  0xf4   : > { %v658_v11 = vsel %vm461_vm0, %v657_v10, 0.0 }
  0xf5   : > { %659 = vadd.xlane.f32.xlu1 %v658_v11 }
 0x17e   : > { %v471_v17 = vpop.xlane.xlu1 %470 }
 0x17f   : > { %v472_v18 = vmul.f32 0.03125, %v471_v17 }
 0x181   : > { %v473_v19 = vadd.f32 1e-05, %v472_v18 }
 0x182   : > { %v660_v20 = vpop.xlane.xlu1 %659 }
 0x183   : > { %1807 = vrsqrt.f32 %v473_v19  ;;  %v661_v21 = vmul.f32 0.03125, %v660_v20 }
 0x185   : > { %v662_v22 = vadd.f32 1e-05, %v661_v21 }
 0x187   : > { %1809 = vrsqrt.f32 %v662_v22 }
 0x18d   : > { %v1808_v23 = vpop.eup %1807 }
 0x18e   : > { %v475_v25 = vmul.f32 %v1808_v23, %v467_v4 }
 0x190   : > { %v482_v27 = vmul.f32 %v1581_v24, %v475_v25 }
 0x191   : > { %v1810_v28 = vpop.eup %1809 }
 0x192   : > { %v489_v29 = vadd.f32 %v1582_v26, %v482_v27  ;;  %v664_v30 = vmul.f32 %v1810_v28, %v656_v8 }
 0x194   : > { %v490_v32 = vpack.c.bf16 %v489_v29, %v489_v29  ;;  %v671_v33 = vmul.f32 %v1581_v24, %v664_v30 }
 0x196   : > { %1621 = vmatmul.mubr.msk.bf16.vlgmr.msra.gmra.mrb[0].mxu1 %vm461_vm0, %v490_v32  ;;  %v678_v34 = vadd.f32 %v1582_v26, %v671_v33 }
 0x197   : > { %1625 = vmatpush3.bf16.msra.mxu1 %v1798_v31  ;;  %1628 = vmatprep.mubr.msk.bf16.mxu1 %vm1982_vm1, %v1981_v14 }
 0x198   : > { %1626 = vmatprep.subr.bf16.mxu1 %v1981_v14  ;;  %v679_v36 = vpack.c.bf16 %v678_v34, %v678_v34 }
 0x19a   : > { %1637 = vmatmul.mubr.msk.bf16.vlgmr.msra.gmra.mrb[0].mxu0 %vm461_vm0, %v679_v36 }
 0x19b   : > { %1627 = vmatpush3.bf16.msra.mxu1 %v1800_v35  ;;  %1648 = vmatprep.mubr.msk.bf16.mxu0 %vm1982_vm1, %v1981_v14 }
 0x19c   : > { %1640 = vmatprep.subr.bf16.mxu1 %v1981_v14 }
 0x19e   : > { %1629 = vmatmul.mubr.msk.bf16.vlgmr.msra.gmra.mrb[4].mxu1 %vm461_vm0, %v490_v32 }
 0x19f   : > { %1642 = vmatprep.mubr.msk.bf16.mxu1 %vm1982_vm1, %v1981_v14 }
 0x269   : > { %v544_v37 = vpop.f32.mrb[0].mxu1 }
 0x26a   : > { %v606_v38 = vpack.c.bf16 %v544_v37, %v544_v37  ;;  %v1622_v39 = vpop.f32.mrb[1].mxu1 }
 0x26b   : > { %v547_v40 = vpop.f32.mrb[2].mxu1 }
 0x26c   : > { %608 = vst.msk [vmem:[#allocation2] sm:$0xf] %vm607_vm2, %v606_v38  ;;  %627 = vrot.lane.b32.xlu1 %v606_v38, %s1983_s28  ;;  %614 = vrot.lane.b32.xlu0 %v606_v38, %s1984_s14  ;;  %v1623_v41 = vpop.f32.mrb[3].mxu1 }
 0x26d   : > { %v733_v42 = vpop.f32.mrb[0].mxu0 }
 0x26e   : > { %v739_v43 = vpack.c.bf16 %v733_v42, %v733_v42  ;;  %v1638_v44 = vpop.f32.mrb[1].mxu0 }
 0x26f   : > { %v736_v45 = vpop.f32.mrb[2].mxu0 }
 0x270   : > { %741 = vst.msk [vmem:[#allocation4] sm:$0xf] %vm607_vm2, %v739_v43  ;;  %v1639_v46 = vpop.f32.mrb[3].mxu0  ;;  %637 = vrot.lane.b32.xlu1 %v606_v38, %s1985_s17  ;;  %750 = vrot.lane.b32.xlu0 %v739_v43, %s1983_s28 }
 0x271   : > { %v600_v47 = vpop.f32.mrb[4].mxu1 }
 0x272   : > { %v2244_v48 = vpack.c.bf16 %v600_v47, %v600_v47  ;;  %v1630_v49 = vpop.f32.mrb[5].mxu1 }
 0x273   : > { %v603_v50 = vpop.f32.mrb[6].mxu1  ;;  %v764_v51 = vld [vmem:[#allocation2] sm:$0xf] }
 0x274   : > { %610 = vst.msk [vmem:[#allocation3] sm:$0xf] %vm607_vm2, %v2244_v48  ;;  %745 = vrot.lane.b32.xlu1 %v739_v43, %s1984_s14  ;;  %v1631_v52 = vpop.f32.mrb[7].mxu1  ;;  %v773_v53 = vsel %vm768_vm3, %v764_v51, 0 }
 0x275   : > { %1641 = vmatpush3.bf16.xpose.msra.mxu1 %v773_v53 }
 0x276   : > { %1652 = vmatprep.subr.bf16.mxu1 %v1981_v14 }
 0x277   : > { %v760_v54 = vld [vmem:[#allocation4] sm:$0xf] }
 0x278   : > { %755 = vrot.lane.b32.xlu1 %v739_v43, %s1985_s17 }
 0x27b   : > { %v1005_v3 = vld [vmem:[#allocation3] sm:$0xf] }
 0x27c   : > { %1643 = vmatmul.mubr.msk.bf16.vlgmr.msra.gmra.mrb[8].mxu1 %vm768_vm3, %v760_v54  ;;  %v1014_v7 = vsel %vm1012_vm4, %v1005_v3, 0 }
 0x27d   : > { %1654 = vmatprep.mubr.msk.bf16.mxu1 %vm1982_vm1, %v1981_v14 }
 0x2de   : > { %v628_v55 = vpop.permute.xlu1 %627  ;;  %v615_v56 = vpop.permute.xlu0 %614 }
 0x2df   : > { %631 = vst.msk [vmem:[#allocation2 + $0x8] sm:$0xf] %vm607_vm2, %v628_v55  ;;  %618 = vst.msk [vmem:[#allocation2 + $0x4] sm:$0xf] %vm607_vm2, %v615_v56 }
 0x2e2   : > { %v638_v57 = vpop.permute.xlu1 %637  ;;  %v751_v58 = vpop.permute.xlu0 %750 }
 0x2e3   : > { %641 = vst.msk [vmem:[#allocation2 + $0xc] sm:$0xf] %vm607_vm2, %v638_v57  ;;  %754 = vst.msk [vmem:[#allocation4 + $0x8] sm:$0xf] %vm607_vm2, %v751_v58 }
 0x2e6   : > { %v746_v59 = vpop.permute.xlu1 %745  ;;  %v765_v60 = vld [vmem:[#allocation2 + $0x4] sm:$0xf]  ;;  %v766_v61 = vld [vmem:[#allocation2 + $0x8] sm:$0xf] }
 0x2e7   : > { %749 = vst.msk [vmem:[#allocation4 + $0x4] sm:$0xf] %vm607_vm2, %v746_v59  ;;  %v819_v62 = vsel %vm768_vm3, %v765_v60, 0  ;;  %v865_v63 = vsel %vm768_vm3, %v766_v61, 0 }
 0x2e8   : > { %1647 = vmatpush3.bf16.xpose.msra.mxu0 %v819_v62  ;;  %1653 = vmatpush3.bf16.xpose.msra.mxu1 %v865_v63 }
 0x2e9   : > { %1658 = vmatprep.subr.bf16.mxu0 %v1981_v14  ;;  %1664 = vmatprep.subr.bf16.mxu1 %v1981_v14 }
 0x2ea   : > { %v756_v1 = vpop.permute.xlu1 %755  ;;  %v767_v2 = vld [vmem:[#allocation2 + $0xc] sm:$0xf]  ;;  %v762_v5 = vld [vmem:[#allocation4 + $0x8] sm:$0xf] }
 0x2eb   : > { %759 = vst.msk [vmem:[#allocation4 + $0xc] sm:$0xf] %vm607_vm2, %v756_v1  ;;  %v911_v6 = vsel %vm768_vm3, %v767_v2, 0 }
 0x2ee   : > { %v761_v4 = vld [vmem:[#allocation4 + $0x4] sm:$0xf] }
 0x2ef   : > { %1649 = vmatmul.mubr.msk.bf16.vlgmr.msra.gmra.mrb[4].mxu0 %vm768_vm3, %v761_v4  ;;  %1655 = vmatmul.mubr.msk.bf16.vlgmr.msra.gmra.mrb[12].mxu1 %vm768_vm3, %v762_v5 }
 0x2f0   : > { %1659 = vmatpush3.bf16.xpose.msra.mxu0 %v911_v6  ;;  %1665 = vmatpush3.bf16.msra.mxu1 %v1014_v7 }
 0x2f1   : > { %1660 = vmatprep.mubr.msk.bf16.mxu0 %vm1982_vm1, %v1981_v14  ;;  %1666 = vmatprep.mubr.msk.bf16.mxu1 %vm1982_vm1, %v1981_v14 }
 0x2f2   : > { %1670 = vmatprep.subr.bf16.mxu0 %v1981_v14  ;;  %1676 = vmatprep.subr.bf16.mxu1 %v1981_v14  ;;  %v763_v8 = vld [vmem:[#allocation4 + $0xc] sm:$0xf] }
 0x2f7   : > { %1661 = vmatmul.mubr.msk.bf16.vlgmr.msra.gmra.mrb[8].mxu0 %vm768_vm3, %v763_v8 }
 0x2f8   : > { %1672 = vmatprep.mubr.msk.bf16.mxu0 %vm1982_vm1, %v1981_v14 }
 0x34f   : > { %v809_v9 = vpop.f32.mrb[8].mxu1 }
 0x350   : > { %v953_v10 = vmul.f32 0.35355338, %v809_v9  ;;  %v1644_v11 = vpop.f32.mrb[9].mxu1 }
 0x351   : > { %v812_v12 = vpop.f32.mrb[10].mxu1 }
 0x352   : > { %v1645_v13 = vpop.f32.mrb[11].mxu1  ;;  %v957_v15 = vsel %vm768_vm3, %v953_v10, -inf }
 0x353   : > { %958 = vmax.xlane.f32.xlu0 %v957_v15 }
 0x3c2   : > { %v855_v16 = vpop.f32.mrb[4].mxu0  ;;  %v901_v17 = vpop.f32.mrb[12].mxu1 }
 0x3c3   : > { %v954_v18 = vmul.f32 0.35355338, %v855_v16  ;;  %v955_v19 = vmul.f32 0.35355338, %v901_v17  ;;  %v1650_v20 = vpop.f32.mrb[5].mxu0  ;;  %v1656_v21 = vpop.f32.mrb[13].mxu1 }
 0x3c4   : > { %v858_v22 = vpop.f32.mrb[6].mxu0  ;;  %v904_v23 = vpop.f32.mrb[14].mxu1 }
 0x3c5   : > { %v1651_v24 = vpop.f32.mrb[7].mxu0  ;;  %v1657_v25 = vpop.f32.mrb[15].mxu1  ;;  %v960_v26 = vsel %vm768_vm3, %v954_v18, -inf  ;;  %v963_v27 = vsel %vm768_vm3, %v955_v19, -inf }
 0x3c6   : > { %961 = vmax.xlane.f32.xlu1 %v960_v26  ;;  %964 = vmax.xlane.f32.xlu0 %v963_v27 }
 0x3ca   : > { %v947_v28 = vpop.f32.mrb[8].mxu0 }
 0x3cb   : > { %v956_v29 = vmul.f32 0.35355338, %v947_v28  ;;  %v1662_v30 = vpop.f32.mrb[9].mxu0 }
 0x3cc   : > { %v950_v31 = vpop.f32.mrb[10].mxu0 }
 0x3cd   : > { %v1663_v32 = vpop.f32.mrb[11].mxu0  ;;  %v966_v33 = vsel %vm768_vm3, %v956_v29, -inf }
 0x3ce   : > { %967 = vmax.xlane.f32.xlu0 %v966_v33 }
 0x3e0   : > { %v959_v34 = vpop.xlane.xlu0 %958 }
 0x3e1   : > { %v969_v35 = vsub.f32 %v953_v10, %v959_v34 }
 0x3e3   : > { %v973_v36 = vmul.f32 1.442695, %v969_v35 }
 0x3e5   : > { %1811 = vpow2.f32 %v973_v36 }
 0x3ef   : > { %v1812_v37 = vpop.eup %1811 }
 0x3f0   : > { %v981_v38 = vsel %vm768_vm3, %v1812_v37, 0.0 }
 0x3f1   : > { %982 = vadd.xlane.f32.xlu0 %v981_v38 }
 0x453   : > { %v962_v39 = vpop.xlane.xlu1 %961  ;;  %v965_v40 = vpop.xlane.xlu0 %964 }
 0x454   : > { %v970_v41 = vsub.f32 %v954_v18, %v962_v39  ;;  %v971_v42 = vsub.f32 %v955_v19, %v965_v40 }
 0x456   : > { %v975_v43 = vmul.f32 1.442695, %v970_v41  ;;  %v977_v44 = vmul.f32 1.442695, %v971_v42 }
 0x458   : > { %1813 = vpow2.f32 %v975_v43 }
 0x459   : > { %1815 = vpow2.f32 %v977_v44  ;;  %v1801_v44 = vld [vmem:[#allocation9] sm:$0xff]  }
 0x45b   : > { %v968_v50 = vpop.xlane.xlu0 %967 }
 0x45c   : > { %v972_v52 = vsub.f32 %v956_v29, %v968_v50  ;;  %v1562_v50 = vld [vmem:[%s2414_s10] ss:$0 sm:$0xff] }
 0x45e   : > { %v979_v53 = vmul.f32 1.442695, %v972_v52  ;;  %v1563_v52 = vld [vmem:[%s2415_s11] ss:$0 sm:$0xff] }
 0x462   : > { %v1814_v45 = vpop.eup %1813 }
 0x463   : > { %v1816_v46 = vpop.eup %1815  ;;  %v984_v47 = vsel %vm768_vm3, %v1814_v45, 0.0 }
 0x464   : > { %985 = vadd.xlane.f32.xlu1 %v984_v47  ;;  %v987_v49 = vsel %vm768_vm3, %v1816_v46, 0.0 }
 0x465   : > { %988 = vadd.xlane.f32.xlu0 %v987_v49 }
 0x475   : > { %632 = vrot.lane.b32.xlu1 %v2244_v48, %s1983_s28  ;;  %s1990_s28 = smov [#allocation11]  }
 0x47b   : > { %622 = vrot.lane.b32.xlu0 %v2244_v48, %s1984_s14  ;;  %s1893_s14 = sshll.u32 %s1990_s28, 4  ;;  %s1894_s14 = int_to_ptr.vmem [resolvable:$false] %s1893_s14 }
 0x47e   : > { %v983_v51 = vpop.xlane.xlu0 %982 }
 0x47f   : > { %1817 = vrcp.f32 %v983_v51 }
 0x480   : > { %1819 = vpow2.f32 %v979_v53 }
 0x489   : > { %v1818_v54 = vpop.eup %1817 }
 0x48a   : > { %v997_v55 = vmul.f32 %v1818_v54, %v1812_v37  ;;  %v1820_v57 = vpop.eup %1819 }
 0x48b   : > { %v990_v58 = vsel %vm768_vm3, %v1820_v57, 0.0 }
 0x48c   : > { %v1001_v56 = vpack.c.bf16 %v997_v55, %v997_v55 }
 0x48e   : > { %1667 = vmatmul.mubr.msk.bf16.vlgmr.msra.gmra.mrb[16].mxu1 %vm768_vm3, %v1001_v56  ;;  %v1803_v56 = vld [vmem:[%s2412_s8] sm:$0xff]  }
 0x48f   : > { %1678 = vmatprep.mubr.msk.bf16.mxu1 %vm1982_vm1, %v1981_v14 }
 0x499   : > { %991 = vadd.xlane.f32.xlu1 %v990_v58  ;;  %v1805_v58 = vld [vmem:[%s2412_s8 + $0x10] sm:$0xff]  }
 0x4aa   : > { %642 = vrot.lane.b32.xlu1 %v2244_v48, %s1985_s17  ;;  %s1895_s17 = scalar_lea.vmem %s1894_s14, 256 }
 0x4f1   : > { %v986_v59 = vpop.xlane.xlu1 %985 }
 0x4f2   : > { %1821 = vrcp.f32 %v986_v59  ;;  %v989_v60 = vpop.xlane.xlu0 %988  ;;  %v1806_v59 = vld [vmem:[%s2412_s8 + $0x18] sm:$0xff]  }
 0x4f3   : > { %1823 = vrcp.f32 %v989_v60  ;;  %v1564_v60 = vld [vmem:[%s2411_s7] ss:$0 sm:$0xff] }
 0x4f5   : > { %v633_v61 = vpop.permute.xlu1 %632 }
 0x4f6   : > { %636 = vst.msk [vmem:[#allocation3 + $0x8] sm:$0xf] %vm607_vm2, %v633_v61  ;;  %v623_v62 = vpop.permute.xlu0 %622 }
 0x4f7   : > { %626 = vst.msk [vmem:[#allocation3 + $0x4] sm:$0xf] %vm607_vm2, %v623_v62 }
 0x4fc   : > { %v1822_v63 = vpop.eup %1821 }
 0x4fd   : > { %v1824_v1 = vpop.eup %1823  ;;  %v998_v2 = vmul.f32 %v1822_v63, %v1814_v45  ;;  %v1007_v3 = vld [vmem:[#allocation3 + $0x8] sm:$0xf]  ;;  %v1802_v45 = vld [vmem:[#allocation9 + $0x8] sm:$0xff]  }
 0x4fe   : > { %v999_v4 = vmul.f32 %v1824_v1, %v1816_v46  ;;  %v1006_v5 = vld [vmem:[#allocation3 + $0x4] sm:$0xf]  ;;  %v1106_v6 = vsel %vm1012_vm4, %v1007_v3, 0 }
 0x4ff   : > { %v1060_v48 = vsel %vm1012_vm4, %v1006_v5, 0  ;;  %1677 = vmatpush3.bf16.msra.mxu1 %v1106_v6  ;;  %v1002_v7 = vpack.c.bf16 %v998_v2, %v998_v2 }
 0x500   : > { %1671 = vmatpush3.bf16.msra.mxu0 %v1060_v48  ;;  %v1003_v8 = vpack.c.bf16 %v999_v4, %v999_v4  ;;  %1688 = vmatprep.subr.bf16.mxu1 %v1981_v14 }
 0x501   : > { %1682 = vmatprep.subr.bf16.mxu0 %v1981_v14 }
 0x502   : > { %1679 = vmatmul.mubr.msk.bf16.vlgmr.msra.gmra.mrb[20].mxu1 %vm768_vm3, %v1003_v8 }
 0x503   : > { %1673 = vmatmul.mubr.msk.bf16.vlgmr.msra.gmra.mrb[12].mxu0 %vm768_vm3, %v1002_v7  ;;  %1692 = vmatprep.mubr.msk.bf16.mxu1 %vm1982_vm1, %v1981_v14 }
 0x504   : > { %1684 = vmatprep.mubr.msk.bf16.mxu0 %vm1982_vm1, %v1981_v14  ;;  %1689 = vmatpush3.bf16.msra.mxu1 %v1801_v44 }
 0x505   : > { %1690 = vmatprep.subr.bf16.mxu1 %v1981_v14 }
 0x508   : > { %1691 = vmatpush3.bf16.msra.mxu1 %v1802_v45 }
 0x526   : > { %v992_v9 = vpop.xlane.xlu1 %991 }
 0x527   : > { %1825 = vrcp.f32 %v992_v9 }
 0x52a   : > { %v643_v10 = vpop.permute.xlu1 %642 }
 0x52b   : > { %646 = vst.msk [vmem:[#allocation3 + $0xc] sm:$0xf] %vm607_vm2, %v643_v10 }
 0x531   : > { %v1826_v11 = vpop.eup %1825 }
 0x532   : > { %v1000_v12 = vmul.f32 %v1826_v11, %v1820_v57  ;;  %v1008_v13 = vld [vmem:[#allocation3 + $0xc] sm:$0xf]  ;;  %v1804_v57 = vld [vmem:[%s2412_s8 + $0x8] sm:$0xff]  }
 0x533   : > { %v1152_v15 = vsel %vm1012_vm4, %v1008_v13, 0 }
 0x534   : > { %1683 = vmatpush3.bf16.msra.mxu0 %v1152_v15  ;;  %v1004_v16 = vpack.c.bf16 %v1000_v12, %v1000_v12 }
 0x535   : > { %1696 = vmatprep.subr.bf16.mxu0 %v1981_v14 }
 0x537   : > { %1685 = vmatmul.mubr.msk.bf16.vlgmr.msra.gmra.mrb[16].mxu0 %vm768_vm3, %v1004_v16 }
 0x538   : > { %1704 = vmatprep.mubr.msk.bf16.mxu0 %vm1982_vm1, %v1981_v14  ;;  %1697 = vmatpush3.bf16.msra.mxu0 %v1803_v56 }
 0x539   : > { %1698 = vmatprep.subr.bf16.mxu0 %v1981_v14 }
 0x53c   : > { %1699 = vmatpush3.bf16.msra.mxu0 %v1804_v57 }
 0x53d   : > { %1700 = vmatprep.subr.bf16.mxu0 %v1981_v14 }
 0x540   : > { %1701 = vmatpush3.bf16.msra.mxu0 %v1805_v58 }
 0x541   : > { %1702 = vmatprep.subr.bf16.mxu0 %v1981_v14 }
 0x544   : > { %1703 = vmatpush3.bf16.msra.mxu0 %v1806_v59 }
 0x561   : > { %v1050_v17 = vpop.f32.mrb[16].mxu1 }
 0x562   : > { %1194 = vst.msk [vmem:[#allocation5] sm:$0xff] %vm768_vm3, %v1050_v17  ;;  %v1668_v18 = vpop.f32.mrb[17].mxu1 }
 0x563   : > { %v1053_v19 = vpop.f32.mrb[18].mxu1 }
 0x564   : > { %v1669_v20 = vpop.f32.mrb[19].mxu1 }
 0x5d5   : > { %v1142_v21 = vpop.f32.mrb[20].mxu1 }
 0x5d6   : > { %v1096_v22 = vpop.f32.mrb[12].mxu0  ;;  %1202 = vrot.lane.b32.xlu0 %v1142_v21, %s1986_s23  ;;  %v1680_v23 = vpop.f32.mrb[21].mxu1 }
 0x5d7   : > { %1196 = vrot.lane.b32.xlu1 %v1096_v22, %s1987_s18  ;;  %v1674_v24 = vpop.f32.mrb[13].mxu0  ;;  %v1145_v25 = vpop.f32.mrb[22].mxu1  ;;  %v1989_v22 = vmov -1.0   ;;  %s446_s18 = sand.u32 1, %s1959_s22  }
 0x5d8   : > { %v1099_v26 = vpop.f32.mrb[14].mxu0  ;;  %v1681_v27 = vpop.f32.mrb[23].mxu1  ;;  %s1425_s24 = scalar_lea.sflag [#allocation8], %s446_s18 }
 0x5d9   : > { %v1675_v28 = vpop.f32.mrb[15].mxu0 }
 0x60a   : > { %v1188_v29 = vpop.f32.mrb[16].mxu0 }
 0x60b   : > { %1208 = vrot.lane.b32.xlu1 %v1188_v29, %s1988_s29  ;;  %v1686_v30 = vpop.f32.mrb[17].mxu0  ;;  %s1540_s29 = sshll.u32 %s446_s18, 3  ;;  %v1568_v29 = vld [vmem:[%s2413_s9] ss:$0 sm:$0xff] }
 0x60c   : > { %v1191_v31 = vpop.f32.mrb[18].mxu0  ;;  %s448_s27 = scalar_lea.vmem [#allocation11], %s1540_s29 }
 0x60d   : > { %v1687_v32 = vpop.f32.mrb[19].mxu0  ;;  %s1439_s19 = sshll.u32 %s448_s27, 4  ;;  %s2358_s19 = int_to_ptr.vmem [resolvable:$true] %s1439_s19 }
 0x60e   : > { %s1889_s26 = scalar_lea.vmem %s2358_s19, 128  ;;  %p1896_p2 = scmp.lt.s32.totalorder %s2358_s19, %s1894_s14 }
 0x60f   : > { %p1890_p13 = scmp.ne.s32.totalorder %s2358_s19, %s1889_s26  ;;  %p1897_p3 = scmp.lt.s32.totalorder %s1895_s17, %s1889_s26 }
 0x611   : > { %p1891_p10 = pnand %p1890_p13, %p2445_p8  ;;  %p1898_p5 = por %p1897_p3, %p1896_p2 }
 0x613   : > { %p1892_p11 = pneg %p1891_p10 }
 0x615   : > { %p1899_p6 = pnand %p1898_p5, %p1892_p11 }
 0x648   : > { %v1203_v33 = vpop.permute.xlu0 %1202 }
 0x649   : > { %v1197_v34 = vpop.permute.xlu1 %1196 }
 0x64a   : > { %1200 = vst.msk [vmem:[#allocation5] sm:$0xff] %vm1199_vm5, %v1197_v34 }
 0x64b   : > { %1206 = vst.msk [vmem:[#allocation5] sm:$0xff] %vm1205_vm6, %v1203_v33 }
 0x67d   : > { %v1209_v35 = vpop.permute.xlu1 %1208 }
 0x67e   : > { %1212 = vst.msk [vmem:[#allocation5] sm:$0xff] %vm1211_vm7, %v1209_v35 }
 0x685   : > { %v1213_v36 = vld [vmem:[#allocation5] sm:$0xff] }
 0x686   : > { %v2315_v37 = vadd.f32 %v1213_v36, %v2191_v0 }
 0x688   : > { %v1217_v38 = vsel %vm461_vm0, %v2315_v37, 0.0 }
 0x689   : > { %1218 = vadd.xlane.f32.xlu0 %v1217_v38 }
 0x716   : > { %v1219_v39 = vpop.xlane.xlu0 %1218 }
 0x717   : > { %v1220_v40 = vmul.f32 0.03125, %v1219_v39 }
 0x719   : > { %v1221_v41 = vsub.f32 %v2315_v37, %v1220_v40 }
 0x71b   : > { %v1222_v42 = vmul.f32 %v1221_v41, %v1221_v41 }
 0x71d   : > { %v1223_v43 = vsel %vm461_vm0, %v1222_v42, 0.0 }
 0x71e   : > { %1224 = vadd.xlane.f32.xlu1 %v1223_v43 }
 0x7ab   : > { %v1225_v0 = vpop.xlane.xlu1 %1224 }
 0x7ac   : > { %v1226_v46 = vmul.f32 0.03125, %v1225_v0 }
 0x7ae   : > { %v1227_v47 = vadd.f32 1e-05, %v1226_v46 }
 0x7b0   : > { %1827 = vrsqrt.f32 %v1227_v47 }
 0x7ba   : > { %v1828_v49 = vpop.eup %1827 }
 0x7bb   : > { %v1229_v51 = vmul.f32 %v1828_v49, %v1221_v41 }
 0x7bd   : > { %v1236_v53 = vmul.f32 %v1562_v50, %v1229_v51 }
 0x7bf   : > { %v1243_v54 = vadd.f32 %v1563_v52, %v1236_v53 }
 0x7c1   : > { %v1244_v55 = vpack.c.bf16 %v1243_v54, %v1243_v54 }
 0x7c3   : > { %1693 = vmatmul.mubr.msk.bf16.vlgmr.msra.gmra.mrb[24].mxu1 %vm461_vm0, %v1244_v55 }
 0x896   : > { %v1305_v61 = vpop.f32.mrb[24].mxu1 }
 0x897   : > { %v1306_v62 = vadd.f32 %v1564_v60, %v1305_v61  ;;  %v1694_v63 = vpop.f32.mrb[25].mxu1 }
 0x898   : > { %v1308_v1 = vpop.f32.mrb[26].mxu1 }
 0x899   : > { %v1312_v2 = vmul.f32 0.70710677, %v1306_v62  ;;  %v1695_v3 = vpop.f32.mrb[27].mxu1  ;;  %v1311_v25 = vmul.f32 0.5, %v1306_v62 }
 0x89b   : > { %v1315_v4 = vand.u32 2147483647, %v1312_v2  ;;  %vm1313_vm8 = vcmp.ge.f32.partialorder %v1312_v2, 0.0 }
 0x89c   : > { %v1314_v23 = vsel %vm1313_vm8, 1.0, %v1989_v22 }
 0x89d   : > { %v1316_v5 = vmul.f32 0.3275911, %v1315_v4  ;;  %v1329_v14 = vsub.f32 0.0, %v1315_v4 }
 0x89f   : > { %v1317_v6 = vadd.f32 1.0, %v1316_v5  ;;  %v1330_v7 = vmul.f32 %v1329_v14, %v1315_v4 }
 0x8a1   : > { %1829 = vrcp.f32 %v1317_v6  ;;  %v1331_v10 = vmul.f32 1.442695, %v1330_v7 }
 0x8a3   : > { %1831 = vpow2.f32 %v1331_v10 }
 0x8ab   : > { %v1830_v48 = vpop.eup %1829 }
 0x8ac   : > { %v1320_v8 = vmul.f32 1.0614054, %v1830_v48 }
 0x8ad   : > { %v1832_v19 = vpop.eup %1831 }
 0x8ae   : > { %v1321_v9 = vadd.f32 -1.4531521, %v1320_v8 }
 0x8b0   : > { %v1322_v11 = vmul.f32 %v1830_v48, %v1321_v9 }
 0x8b2   : > { %v1323_v12 = vadd.f32 1.4214138, %v1322_v11 }
 0x8b4   : > { %v1324_v13 = vmul.f32 %v1830_v48, %v1323_v12 }
 0x8b6   : > { %v1325_v15 = vadd.f32 -0.28449672, %v1324_v13 }
 0x8b8   : > { %v1326_v16 = vmul.f32 %v1830_v48, %v1325_v15 }
 0x8ba   : > { %v1327_v17 = vadd.f32 0.2548296, %v1326_v16 }
 0x8bc   : > { %v1328_v18 = vmul.f32 %v1830_v48, %v1327_v17 }
 0x8be   : > { %v1333_v20 = vmul.f32 %v1832_v19, %v1328_v18 }
 0x8c0   : > { %v1334_v21 = vsub.f32 1.0, %v1333_v20 }
 0x8c2   : > { %v1335_v24 = vmul.f32 %v1334_v21, %v1314_v23 }
 0x8c4   : > { %v1336_v26 = vadd.f32 1.0, %v1335_v24 }
 0x8c6   : > { %v1337_v27 = vmul.f32 %v1336_v26, %v1311_v25 }
 0x8c8   : > { %v1338_v28 = vpack.c.bf16 %v1337_v27, %v1337_v27 }
 0x8ca   : > { %1705 = vmatmul.mubr.msk.bf16.vlgmr.msra.gmra.mrb[20].mxu0 %vm1378_vm9, %v1338_v28 }
 0x99d   : > { %v1416_v30 = vpop.f32.mrb[20].mxu0 }
 0x99e   : > { %v1417_v31 = vadd.f32 %v1568_v29, %v1416_v30  ;;  %v1706_v32 = vpop.f32.mrb[21].mxu0 }
 0x99f   : > { %v1419_v33 = vpop.f32.mrb[22].mxu0 }
 0x9a0   : > { %v1422_v34 = vadd.f32 %v1417_v31, %v2315_v37  ;;  %v1707_v35 = vpop.f32.mrb[23].mxu0 }
 0x9a2   : > { %1423 = vst.msk [vmem:[%s448_s27] sm:$0xff] %vm461_vm0, %v1422_v34 }
 0x9a3   : > { %1902 = shalt.err (!%p1899_p6)
}
 0x9a4   : > { %s1903_s23 = scalar_lea.hbm %s2356_s21, 128  ;;  %s1907_s25 = scalar_lea.hbm %s2444_s12, 256 }
 0x9a5   : > { %p1904_p7 = scmp.ne.s32.totalorder %s2356_s21, %s1903_s23  ;;  %p1908_p0 = scmp.lt.u32.totalorder %s2356_s21, %s2444_s12 }
 0x9a6   : > { %p1909_p4 = scmp.lt.u32.totalorder %s1907_s25, %s1903_s23  ;;  %p1911_p13 = scmp.lt.u32.totalorder %s1903_s23, %s2356_s21 }
 0x9a7   : > { %p1905_p9 = pnand %p1904_p7, %p2445_p8 }
 0x9a8   : > { %p1910_p1 = por %p1909_p4, %p1908_p0 }
 0x9a9   : > { %p1906_p12 = pneg %p1905_p9 }
 0x9aa   : > { %p1912_p10 = por %p1911_p13, %p1910_p1 }
 0x9ac   : > { %p1913_p11 = pnand %p1912_p10, %p1906_p12 }
 0x9ae   : > { %1916 = shalt.err (!%p1913_p11)
}
 0x9af   : > { %1716 = dma.vmem_to_hbm [thread:$0]  (%p2445_p8), %s2358_s19, 128, %s2356_s21, %s1425_s24  }
 0x9b0 PF: > { %s2446_s27 = sld [smem:[#allocation18_spill]]  ;;  %s2447_s30 = sld [smem:[#allocation15_spill]] }
 0x9b1   : > { %s2448_s20 = sld [smem:[#allocation20_spill]] }
 0x9b6   : > { %p1733_p2 = scmp.ge.s32.totalorder %s2446_s27, 2  ;;  %s1451_s26 = sand.u32 1, %s2447_s30  }
 0x9b7   : > { %p2449_p3 = scmp.ne.s32.totalorder %s2448_s20, 0  ;;  %s1452_s28 = scalar_lea.sflag [#allocation8], %s1451_s26 }
 0x9b9   : > { %p1726_p5 = pnand %p1733_p2, %p2449_p3 }
 0x9bb   : > { %1950 = dma.done.wait (!%p1726_p5), %s1452_s28, 128  }
 0x9bc   : > { %1952 = vsyncadd (!%p1726_p5), %s1452_s28, 4294967168  ;;  %s27_s26 = sadd.s32 1, %s2446_s27   ;;  %s2450_s14 = sld [smem:[#allocation16_spill]] }
 0x9bd   : > { %p24_p6 = scmp.ge.s32.totalorder %s27_s26, 4   ;;  %s2451_s23 = sld [smem:[#allocation21_spill]] }
 0x9be   : > { %s2452_s24 = sld [smem:[#allocation17_spill]]  ;;  %s2453_s25 = sld [smem:[#allocation19_spill]] }
 0x9bf   : > { %s2454_s21 = smov %s1959_s22  ;;  %26 = sbr.rel (!%p24_p6) target bundleno = 8 (0x8), region = 126 }
 0x9c2   : > { %s2455_s22 = smov %s2450_s14 }
 0x9c6   :  { %1457 = vsyncpa [#allocation7], 1 }
 0x9c7   :  { %1459 = vsyncpa [#allocation7 + $0x1], 1 }
 0x9c8   :  { %1460 = vsyncpa [#allocation10], 1 }
 0x9c9   :  { %1461 = vsyncpa [#allocation8], 1 }
 0x9ca   :  { %1463 = vsyncpa [#allocation8 + $0x1], 1 }

</bundles_post_ra>
